<compile_context>
chip_gen: v7x
topology: tpu7x:2x2x1
jax: 0.10.0
libtpu: 0.0.40
codegen_flags: <defaults>
</compile_context>

<pallas_src>
import functools

import jax
import jax.numpy as jnp
from jax import lax
from jax.experimental import pallas as pl
from jax.experimental.pallas import tpu as pltpu


def _round_up(x, m):
    return ((x + m - 1) // m) * m


# ----------------------------- fused LSTM + FC chunk kernel -----------------------------
def _lstm_chunk_kernel(x_ref, wih_ref, whh_ref, wfc_ref, bias_ref, bfc_ref,
                       out_ref,
                       gates_scr, hbuf_scr, h_scr, c_scr,
                       *, t_chunk, unroll, first_kept_step):
    """One grid step == one chunk of `t_chunk` timesteps (grid is sequential over time).

    x_ref    : (t_chunk*Bp, D)    time-major input rows for this chunk        [matmul dtype]
    wih_ref  : (D, 4Hp)           W_ih^T, gate-padded                         [matmul dtype]
    whh_ref  : (Hp, 4Hp)          W_hh^T, gate-padded                         [matmul dtype]
    wfc_ref  : (Hp, Op)           W_fc^T, lane-padded                         [matmul dtype]
    bias_ref : (1, 4Hp)  f32      b_ih + b_hh, gate-padded
    bfc_ref  : (1, Op)   f32      fc bias, lane-padded
    out_ref  : (t_chunk*Bp, Op)   f32  fc(h_t) for every step of the chunk (lane dense)
    gates_scr: (t_chunk*Bp, 4Hp)  f32  x @ W_ih^T + bias for this chunk
    hbuf_scr : (t_chunk*Bp, Hp)   f32  hidden states of this chunk (for the epilogue FC)
    h_scr    : (Bp, Hp) [matmul dtype] recurrent h state, persists across chunks
    c_scr    : (Bp, Hp) f32           recurrent c state, persists across chunks
    """
    cdtype = whh_ref.dtype
    hp = whh_ref.shape[0]
    bp = h_scr.shape[0]

    @pl.when(pl.program_id(0) == 0)
    def _():
        h_scr[...] = jnp.zeros_like(h_scr)
        c_scr[...] = jnp.zeros_like(c_scr)

    # --- chunk prologue: input projection for ALL steps at once (one big MXU matmul, off the
    #     step-to-step dependency chain; bias is added here, not per step) ---
    gates_scr[...] = (
        jnp.dot(x_ref[...], wih_ref[...], preferred_element_type=jnp.float32)
        + bias_ref[...]
    )

    # Loop-invariant recurrent weights, hoisted out of the step loop.
    whh = whh_ref[...]

    def step(s, carry):
        h, c = carry                        # h: (Bp, Hp) cdtype, c: (Bp, Hp) f32
        base = s * bp
        if not isinstance(base, int):       # dynamic index (partial unroll): hint alignment
            base = pl.multiple_of(base, bp)
        idx = pl.ds(base, bp)               # tile-aligned sublane window (bp % 8 == 0)
        # Only the sequential part stays per step: h_{t-1} @ W_hh^T.
        gates = gates_scr[idx, :] + jnp.dot(h, whh, preferred_element_type=jnp.float32)
        # PyTorch gate order i, f, g, o; hp % 128 == 0 so every slab is lane aligned.
        # Gate math in f32 (v5e VPU/EUP have no bf16).
        i_g = jax.nn.sigmoid(gates[:, 0 * hp:1 * hp])
        f_g = jax.nn.sigmoid(gates[:, 1 * hp:2 * hp])
        g_g = jnp.tanh(gates[:, 2 * hp:3 * hp])
        o_g = jax.nn.sigmoid(gates[:, 3 * hp:4 * hp])
        c_new = f_g * c + i_g * g_g
        h_new = o_g * jnp.tanh(c_new)
        hbuf_scr[idx, :] = h_new            # full-tile f32 store, no masking
        return (h_new.astype(cdtype), c_new)

    carry = (h_scr[...], c_scr[...])
    if unroll is True:
        # Small chunk: fully static unroll (all slice offsets are Python ints).
        for s in range(t_chunk):
            carry = step(s, carry)
    else:
        carry = lax.fori_loop(0, t_chunk, step, carry, unroll=unroll)
    h, c = carry
    h_scr[...] = h
    c_scr[...] = c

    # --- chunk epilogue: fused nn.Linear over the whole chunk, one lane-dense store ---
    def fc_epilogue():
        out_ref[...] = (
            jnp.dot(hbuf_scr[...].astype(cdtype), wfc_ref[...],
                    preferred_element_type=jnp.float32)
            + bfc_ref[...]
        ).astype(out_ref.dtype)

    if first_kept_step <= 0:
        fc_epilogue()
    else:
        # PyTorch keeps only out[:, -500:]; skip FC + writeback for fully discarded chunks.
        @pl.when((pl.program_id(0) + 1) * t_chunk > first_kept_step)
        def _():
            fc_epilogue()


def _lstm_fc_fused(x2d, wih_t, whh_t, wfc_t, bias_row, bfc_row, *,
                   t_chunk, bp, unroll, first_kept_step):
    """x2d: (Tp*Bp, D) time-major rows -> (Tp*Bp, Op) f32 fused LSTM+FC outputs."""
    rows_total, d = x2d.shape
    g = wih_t.shape[1]                      # 4 * Hp
    hp, op = wfc_t.shape
    rows = t_chunk * bp
    num_chunks = rows_total // rows
    cdtype = whh_t.dtype
    cbytes = jnp.dtype(cdtype).itemsize

    # Explicit VMEM budget (v7x: 64 MiB total / 32 MiB scoped default; v5e default is 16 MiB).
    need = (2 * rows * d * cbytes                 # x block (double buffered)
            + 2 * (d + hp) * g * cbytes           # W_ih^T, W_hh^T
            + 2 * hp * op * cbytes                # W_fc^T
            + 2 * 8 * (g + op) * 4                # bias rows (sublane padded)
            + 2 * rows * op * 4                   # out block (double buffered)
            + rows * g * 4                        # gates scratch
            + rows * hp * 4                       # hidden-state chunk buffer
            + bp * hp * (cbytes + 4))             # carried h / c state
    vmem_limit = int(min(max(32 * 1024 * 1024, (3 * need) // 2 + (1 << 20)),
                         64 * 1024 * 1024))

    kernel = functools.partial(
        _lstm_chunk_kernel, t_chunk=t_chunk, unroll=unroll,
        first_kept_step=first_kept_step)

    return pl.pallas_call(
        kernel,
        out_shape=jax.ShapeDtypeStruct((rows_total, op), jnp.float32),
        grid_spec=pltpu.PrefetchScalarGridSpec(
            num_scalar_prefetch=0,
            grid=(num_chunks,),
            in_specs=[
                pl.BlockSpec((rows, d), lambda c: (c, 0)),
                pl.BlockSpec((d, g), lambda c: (0, 0)),
                pl.BlockSpec((hp, g), lambda c: (0, 0)),
                pl.BlockSpec((hp, op), lambda c: (0, 0)),
                pl.BlockSpec((1, g), lambda c: (0, 0)),
                pl.BlockSpec((1, op), lambda c: (0, 0)),
            ],
            out_specs=pl.BlockSpec((rows, op), lambda c: (c, 0)),
            scratch_shapes=[
                pltpu.VMEM((rows, g), jnp.float32),     # gates for this chunk
                pltpu.VMEM((rows, hp), jnp.float32),    # hidden states for this chunk
                pltpu.VMEM((bp, hp), cdtype),           # h state (carried across chunks)
                pltpu.VMEM((bp, hp), jnp.float32),      # c state (carried across chunks)
            ],
        ),
        compiler_params=pltpu.CompilerParams(
            dimension_semantics=("arbitrary",),         # recurrence: chunks are sequential
            vmem_limit_bytes=vmem_limit,
        ),
    )(x2d, wih_t, whh_t, wfc_t, bias_row, bfc_row)


# ------------------------------ full module forward ------------------------------
def image_sequence_lstm_forward(x, params, *, matmul_dtype=jnp.bfloat16):
    """x: (B, T, input_size) -> (B, min(T, 500), output_size). Matches ImageSequenceLSTM.forward."""
    B, T, D = x.shape
    H = params["w_hh"].shape[1]
    O = params["w_fc"].shape[0]
    Hp = _round_up(H, 128)           # lane-align every gate slab
    Op = _round_up(O, 128)           # lane-dense FC output (unmasked stores)
    Bp = _round_up(B, 8)             # sublane-align the per-step rows
    f32 = jnp.float32
    cdtype = matmul_dtype

    # --- gate-padded, transposed weights; padded rows/cols are exactly zero, which keeps the
    #     padded hidden lanes at h = c = 0 for all time (real lanes unaffected). ---
    w_ih4 = params["w_ih"].reshape(4, H, D).astype(f32)
    w_hh4 = params["w_hh"].reshape(4, H, H).astype(f32)
    b4 = (params["b_ih"] + params["b_hh"]).reshape(4, H).astype(f32)

    wih_t = jnp.zeros((4, Hp, D), f32).at[:, :H, :].set(w_ih4).reshape(4 * Hp, D).T
    whh_t = jnp.zeros((4, Hp, Hp), f32).at[:, :H, :H].set(w_hh4).reshape(4 * Hp, Hp).T
    bias_row = jnp.zeros((4, Hp), f32).at[:, :H].set(b4).reshape(1, 4 * Hp)
    wfc_t = jnp.zeros((Op, Hp), f32).at[:O, :H].set(params["w_fc"].astype(f32)).T
    bfc_row = jnp.zeros((1, Op), f32).at[0, :O].set(params["b_fc"].astype(f32))

    wih_t = wih_t.astype(cdtype)     # (D, 4Hp)
    whh_t = whh_t.astype(cdtype)     # (Hp, 4Hp)
    wfc_t = wfc_t.astype(cdtype)     # (Hp, Op)

    # --- time chunking: pad T with zero timesteps so every chunk is full (padded steps give
    #     deterministic finite values that are sliced off below). ---
    t_chunk = min(_round_up(T, 8), 128)
    num_chunks = pl.cdiv(T, t_chunk)
    Tp = num_chunks * t_chunk
    unroll = True if t_chunk <= 32 else 8

    t_last = min(T, 500)
    first_kept_step = T - t_last     # 0 when T <= 500

    # time-major, batch padded to Bp, time padded to Tp, flattened to 2-D (lane/sublane dense)
    x_t = jnp.transpose(x, (1, 0, 2))                               # (T, B, D)
    x_t = jnp.pad(x_t, ((0, Tp - T), (0, Bp - B), (0, 0)))          # zero padding
    x2d = x_t.astype(cdtype).reshape(Tp * Bp, D)

    out2d = _lstm_fc_fused(
        x2d, wih_t, whh_t, wfc_t, bias_row, bfc_row,
        t_chunk=t_chunk, bp=Bp, unroll=unroll, first_kept_step=first_kept_step)

    out = out2d.reshape(Tp, Bp, Op)[first_kept_step:T, :B, :O]      # (t_last, B, O)
    return jnp.transpose(out, (1, 0, 2))                            # (B, t_last, O)


# ------------------------------ reference (pure JAX) ------------------------------
def _reference_forward(x, params):
    w_ih, w_hh = params["w_ih"], params["w_hh"]
    b = params["b_ih"] + params["b_hh"]
    H = w_hh.shape[1]
    B, T, _ = x.shape

    def step(carry, x_t):
        h, c = carry
        gates = x_t @ w_ih.T + h @ w_hh.T + b
        i = jax.nn.sigmoid(gates[:, 0 * H:1 * H])
        f = jax.nn.sigmoid(gates[:, 1 * H:2 * H])
        g = jnp.tanh(gates[:, 2 * H:3 * H])
        o = jax.nn.sigmoid(gates[:, 3 * H:4 * H])
        c = f * c + i * g
        h = o * jnp.tanh(c)
        return (h, c), h

    init = (jnp.zeros((B, H), jnp.float32), jnp.zeros((B, H), jnp.float32))
    _, hs = jax.lax.scan(step, init, jnp.transpose(x, (1, 0, 2)))
    out = jnp.transpose(hs, (1, 0, 2))
    t_last = min(T, 500)
    out = out[:, -t_last:, :]
    return out @ params["w_fc"].T + params["b_fc"]


# -------------------------------------- main --------------------------------------
if __name__ == "__main__":
    # Small shapes: batch=2, seq=8, input_size=16, hidden=32, output=8
    B, T, D, H, O = 2, 8, 16, 32, 8

    key = jax.random.PRNGKey(0)
    ks = jax.random.split(key, 7)
    bound = 1.0 / (H ** 0.5)   # PyTorch-style uniform(-1/sqrt(H), 1/sqrt(H)) init, deterministic
    params = {
        "w_ih": jax.random.uniform(ks[0], (4 * H, D), jnp.float32, -bound, bound),
        "w_hh": jax.random.uniform(ks[1], (4 * H, H), jnp.float32, -bound, bound),
        "b_ih": jax.random.uniform(ks[2], (4 * H,), jnp.float32, -bound, bound),
        "b_hh": jax.random.uniform(ks[3], (4 * H,), jnp.float32, -bound, bound),
        "w_fc": jax.random.uniform(ks[4], (O, H), jnp.float32, -bound, bound),
        "b_fc": jax.random.uniform(ks[5], (O,), jnp.float32, -bound, bound),
    }
    x = jax.random.normal(ks[6], (B, T, D), jnp.float32)

    y_ref = _reference_forward(x, params)

    # Default path: bf16 matmuls, f32 accumulation.
    y_bf16 = jax.block_until_ready(jax.jit(image_sequence_lstm_forward)(x, params))
    assert y_bf16.shape == (B, min(T, 500), O), y_bf16.shape
    assert jnp.allclose(y_bf16, y_ref, atol=2e-2, rtol=2e-2), "bf16 path mismatch vs reference"

    # Tight numerical check on the f32 path.
    fwd_f32 = jax.jit(functools.partial(image_sequence_lstm_forward,
                                        matmul_dtype=jnp.float32))
    y_f32 = jax.block_until_ready(fwd_f32(x, params))
    assert y_f32.shape == (B, min(T, 500), O), y_f32.shape
    assert jnp.allclose(y_f32, y_ref, atol=1e-5, rtol=1e-5), "f32 path mismatch vs reference"

    print("KERNEL_OK")
</pallas_src>

<mosaic_0001>
module attributes {stable_mosaic.version = 11 : i64} {
  func.func @_lstm_chunk_kernel(%arg0: i32, %arg1: memref<64x16xbf16, #tpu.memory_space<vmem>>, %arg2: memref<16x512xbf16, #tpu.memory_space<vmem>>, %arg3: memref<128x512xbf16, #tpu.memory_space<vmem>>, %arg4: memref<128x128xbf16, #tpu.memory_space<vmem>>, %arg5: memref<1x512xf32, #tpu.memory_space<vmem>>, %arg6: memref<1x128xf32, #tpu.memory_space<vmem>>, %arg7: memref<64x128xf32, #tpu.memory_space<vmem>>, %arg8: memref<64x512xf32, #tpu.memory_space<vmem>>, %arg9: memref<64x128xf32, #tpu.memory_space<vmem>>, %arg10: memref<8x128xbf16, #tpu.memory_space<vmem>>, %arg11: memref<8x128xf32, #tpu.memory_space<vmem>>) attributes {dimension_semantics = [#tpu.dimension_semantics<arbitrary>], iteration_bounds = array<i64: 1>, scalar_prefetch = 0 : i64, scratch_operands = 4 : i64, tpu.core_type = #tpu.core_type<tc>, window_params = [{transform_indices = @transform_0, window_bounds = array<i64: 64, 16>}, {pipeline_mode = #tpu.pipeline_mode<synchronous>, transform_indices = @transform_1, window_bounds = array<i64: 16, 512>}, {pipeline_mode = #tpu.pipeline_mode<synchronous>, transform_indices = @transform_2, window_bounds = array<i64: 128, 512>}, {pipeline_mode = #tpu.pipeline_mode<synchronous>, transform_indices = @transform_3, window_bounds = array<i64: 128, 128>}, {pipeline_mode = #tpu.pipeline_mode<synchronous>, transform_indices = @transform_4, window_bounds = array<i64: 1, 512>}, {pipeline_mode = #tpu.pipeline_mode<synchronous>, transform_indices = @transform_5, window_bounds = array<i64: 1, 128>}, {transform_indices = @transform_6, window_bounds = array<i64: 64, 128>}]} {
    %c0_i32 = arith.constant 0 : i32
    %0 = arith.cmpi eq, %arg0, %c0_i32 : i32
    %1 = arith.extui %0 : i1 to i32
    %c0_i32_0 = arith.constant 0 : i32
    %2 = arith.cmpi ne, %1, %c0_i32_0 : i32
    scf.if %2 {
      %cst_84 = arith.constant 0.000000e+00 : bf16
      %263 = vector.broadcast %cst_84 : bf16 to vector<8x128xbf16>
      %c0_85 = arith.constant 0 : index
      %c0_86 = arith.constant 0 : index
      %264 = vector.load %arg10[%c0_85, %c0_86] : memref<8x128xbf16, #tpu.memory_space<vmem>>, vector<8x128xbf16>
      tpu.vector_store %arg10[%c0_85, %c0_86], %263 {strides = array<i32>} : memref<8x128xbf16, #tpu.memory_space<vmem>>, vector<8x128xbf16>,
      %cst_87 = arith.constant 0.000000e+00 : f32
      %265 = vector.broadcast %cst_87 : f32 to vector<8x128xf32>
      %c0_88 = arith.constant 0 : index
      %c0_89 = arith.constant 0 : index
      %266 = vector.load %arg11[%c0_88, %c0_89] : memref<8x128xf32, #tpu.memory_space<vmem>>, vector<8x128xf32>
      tpu.vector_store %arg11[%c0_88, %c0_89], %265 {strides = array<i32>} : memref<8x128xf32, #tpu.memory_space<vmem>>, vector<8x128xf32>,
    } else {
    }
    %c0 = arith.constant 0 : index
    %c0_1 = arith.constant 0 : index
    %3 = vector.load %arg1[%c0, %c0_1] : memref<64x16xbf16, #tpu.memory_space<vmem>>, vector<64x16xbf16>
    %c0_2 = arith.constant 0 : index
    %c0_3 = arith.constant 0 : index
    %4 = vector.load %arg2[%c0_2, %c0_3] : memref<16x512xbf16, #tpu.memory_space<vmem>>, vector<16x512xbf16>
    %cst = arith.constant dense<0.000000e+00> : vector<64x512xf32>
    %5 = tpu.matmul %3, %4, %cst {dimension_numbers = #tpu.dot_dimension_numbers<[1], [0], [0], [1], [0, 0, 1, 1], [], []>} : vector<64x16xbf16>, vector<16x512xbf16>, vector<64x512xf32> -> vector<64x512xf32>
    %c0_4 = arith.constant 0 : index
    %c0_5 = arith.constant 0 : index
    %6 = vector.load %arg5[%c0_4, %c0_5] : memref<1x512xf32, #tpu.memory_space<vmem>>, vector<1x512xf32>
    %7 = vector.broadcast %6 : vector<1x512xf32> to vector<64x512xf32>
    %8 = arith.addf %5, %7 : vector<64x512xf32>
    %c0_6 = arith.constant 0 : index
    %c0_7 = arith.constant 0 : index
    %9 = vector.load %arg8[%c0_6, %c0_7] : memref<64x512xf32, #tpu.memory_space<vmem>>, vector<64x512xf32>
    tpu.vector_store %arg8[%c0_6, %c0_7], %8 {strides = array<i32>} : memref<64x512xf32, #tpu.memory_space<vmem>>, vector<64x512xf32>,
    %c0_8 = arith.constant 0 : index
    %c0_9 = arith.constant 0 : index
    %10 = vector.load %arg3[%c0_8, %c0_9] : memref<128x512xbf16, #tpu.memory_space<vmem>>, vector<128x512xbf16>
    %c0_10 = arith.constant 0 : index
    %c0_11 = arith.constant 0 : index
    %11 = vector.load %arg10[%c0_10, %c0_11] : memref<8x128xbf16, #tpu.memory_space<vmem>>, vector<8x128xbf16>
    %c0_12 = arith.constant 0 : index
    %c0_13 = arith.constant 0 : index
    %12 = vector.load %arg11[%c0_12, %c0_13] : memref<8x128xf32, #tpu.memory_space<vmem>>, vector<8x128xf32>
    %c0_14 = arith.constant 0 : index
    %c0_15 = arith.constant 0 : index
    %13 = vector.load %arg8[%c0_14, %c0_15] : memref<64x512xf32, #tpu.memory_space<vmem>>, vector<8x512xf32>
    %cst_16 = arith.constant dense<0.000000e+00> : vector<8x512xf32>
    %14 = tpu.matmul %11, %10, %cst_16 {dimension_numbers = #tpu.dot_dimension_numbers<[1], [0], [0], [1], [0, 0, 1, 1], [], []>} : vector<8x128xbf16>, vector<128x512xbf16>, vector<8x512xf32> -> vector<8x512xf32>
    %15 = arith.addf %13, %14 : vector<8x512xf32>
    %16 = vector.extract_strided_slice %15 {offsets = [0, 0], sizes = [8, 128], strides = [1, 1]} : vector<8x512xf32> to vector<8x128xf32>
    %17 = arith.negf %16 : vector<8x128xf32>
    %18 = math.exp %17 : vector<8x128xf32>
    %cst_17 = arith.constant 1.000000e+00 : f32
    %19 = vector.broadcast %cst_17 : f32 to vector<8x128xf32>
    %20 = arith.addf %19, %18 : vector<8x128xf32>
    %21 = arith.divf %19, %20 : vector<8x128xf32>
    %22 = vector.extract_strided_slice %15 {offsets = [0, 128], sizes = [8, 128], strides = [1, 1]} : vector<8x512xf32> to vector<8x128xf32>
    %23 = arith.negf %22 : vector<8x128xf32>
    %24 = math.exp %23 : vector<8x128xf32>
    %cst_18 = arith.constant 1.000000e+00 : f32
    %25 = vector.broadcast %cst_18 : f32 to vector<8x128xf32>
    %26 = arith.addf %25, %24 : vector<8x128xf32>
    %27 = arith.divf %25, %26 : vector<8x128xf32>
    %28 = vector.extract_strided_slice %15 {offsets = [0, 256], sizes = [8, 128], strides = [1, 1]} : vector<8x512xf32> to vector<8x128xf32>
    %29 = math.tanh %28 : vector<8x128xf32>
    %30 = vector.extract_strided_slice %15 {offsets = [0, 384], sizes = [8, 128], strides = [1, 1]} : vector<8x512xf32> to vector<8x128xf32>
    %31 = arith.negf %30 : vector<8x128xf32>
    %32 = math.exp %31 : vector<8x128xf32>
    %cst_19 = arith.constant 1.000000e+00 : f32
    %33 = vector.broadcast %cst_19 : f32 to vector<8x128xf32>
    %34 = arith.addf %33, %32 : vector<8x128xf32>
    %35 = arith.divf %33, %34 : vector<8x128xf32>
    %36 = arith.mulf %27, %12 : vector<8x128xf32>
    %37 = arith.mulf %21, %29 : vector<8x128xf32>
    %38 = arith.addf %36, %37 : vector<8x128xf32>
    %39 = math.tanh %38 : vector<8x128xf32>
    %40 = arith.mulf %35, %39 : vector<8x128xf32>
    %c0_20 = arith.constant 0 : index
    %c0_21 = arith.constant 0 : index
    %41 = vector.load %arg9[%c0_20, %c0_21] : memref<64x128xf32, #tpu.memory_space<vmem>>, vector<8x128xf32>
    tpu.vector_store %arg9[%c0_20, %c0_21], %40 {strides = array<i32>} : memref<64x128xf32, #tpu.memory_space<vmem>>, vector<8x128xf32>,
    %42 = arith.truncf %40 : vector<8x128xf32> to vector<8x128xbf16>
    %c8 = arith.constant 8 : index
    %c0_22 = arith.constant 0 : index
    %43 = vector.load %arg8[%c8, %c0_22] : memref<64x512xf32, #tpu.memory_space<vmem>>, vector<8x512xf32>
    %cst_23 = arith.constant dense<0.000000e+00> : vector<8x512xf32>
    %44 = tpu.matmul %42, %10, %cst_23 {dimension_numbers = #tpu.dot_dimension_numbers<[1], [0], [0], [1], [0, 0, 1, 1], [], []>} : vector<8x128xbf16>, vector<128x512xbf16>, vector<8x512xf32> -> vector<8x512xf32>
    %45 = arith.addf %43, %44 : vector<8x512xf32>
    %46 = vector.extract_strided_slice %45 {offsets = [0, 0], sizes = [8, 128], strides = [1, 1]} : vector<8x512xf32> to vector<8x128xf32>
    %47 = arith.negf %46 : vector<8x128xf32>
    %48 = math.exp %47 : vector<8x128xf32>
    %cst_24 = arith.constant 1.000000e+00 : f32
    %49 = vector.broadcast %cst_24 : f32 to vector<8x128xf32>
    %50 = arith.addf %49, %48 : vector<8x128xf32>
    %51 = arith.divf %49, %50 : vector<8x128xf32>
    %52 = vector.extract_strided_slice %45 {offsets = [0, 128], sizes = [8, 128], strides = [1, 1]} : vector<8x512xf32> to vector<8x128xf32>
    %53 = arith.negf %52 : vector<8x128xf32>
    %54 = math.exp %53 : vector<8x128xf32>
    %cst_25 = arith.constant 1.000000e+00 : f32
    %55 = vector.broadcast %cst_25 : f32 to vector<8x128xf32>
    %56 = arith.addf %55, %54 : vector<8x128xf32>
    %57 = arith.divf %55, %56 : vector<8x128xf32>
    %58 = vector.extract_strided_slice %45 {offsets = [0, 256], sizes = [8, 128], strides = [1, 1]} : vector<8x512xf32> to vector<8x128xf32>
    %59 = math.tanh %58 : vector<8x128xf32>
    %60 = vector.extract_strided_slice %45 {offsets = [0, 384], sizes = [8, 128], strides = [1, 1]} : vector<8x512xf32> to vector<8x128xf32>
    %61 = arith.negf %60 : vector<8x128xf32>
    %62 = math.exp %61 : vector<8x128xf32>
    %cst_26 = arith.constant 1.000000e+00 : f32
    %63 = vector.broadcast %cst_26 : f32 to vector<8x128xf32>
    %64 = arith.addf %63, %62 : vector<8x128xf32>
    %65 = arith.divf %63, %64 : vector<8x128xf32>
    %66 = arith.mulf %57, %38 : vector<8x128xf32>
    %67 = arith.mulf %51, %59 : vector<8x128xf32>
    %68 = arith.addf %66, %67 : vector<8x128xf32>
    %69 = math.tanh %68 : vector<8x128xf32>
    %70 = arith.mulf %65, %69 : vector<8x128xf32>
    %c8_27 = arith.constant 8 : index
    %c0_28 = arith.constant 0 : index
    %71 = vector.load %arg9[%c8_27, %c0_28] : memref<64x128xf32, #tpu.memory_space<vmem>>, vector<8x128xf32>
    tpu.vector_store %arg9[%c8_27, %c0_28], %70 {strides = array<i32>} : memref<64x128xf32, #tpu.memory_space<vmem>>, vector<8x128xf32>,
    %72 = arith.truncf %70 : vector<8x128xf32> to vector<8x128xbf16>
    %c16 = arith.constant 16 : index
    %c0_29 = arith.constant 0 : index
    %73 = vector.load %arg8[%c16, %c0_29] : memref<64x512xf32, #tpu.memory_space<vmem>>, vector<8x512xf32>
    %cst_30 = arith.constant dense<0.000000e+00> : vector<8x512xf32>
    %74 = tpu.matmul %72, %10, %cst_30 {dimension_numbers = #tpu.dot_dimension_numbers<[1], [0], [0], [1], [0, 0, 1, 1], [], []>} : vector<8x128xbf16>, vector<128x512xbf16>, vector<8x512xf32> -> vector<8x512xf32>
    %75 = arith.addf %73, %74 : vector<8x512xf32>
    %76 = vector.extract_strided_slice %75 {offsets = [0, 0], sizes = [8, 128], strides = [1, 1]} : vector<8x512xf32> to vector<8x128xf32>
    %77 = arith.negf %76 : vector<8x128xf32>
    %78 = math.exp %77 : vector<8x128xf32>
    %cst_31 = arith.constant 1.000000e+00 : f32
    %79 = vector.broadcast %cst_31 : f32 to vector<8x128xf32>
    %80 = arith.addf %79, %78 : vector<8x128xf32>
    %81 = arith.divf %79, %80 : vector<8x128xf32>
    %82 = vector.extract_strided_slice %75 {offsets = [0, 128], sizes = [8, 128], strides = [1, 1]} : vector<8x512xf32> to vector<8x128xf32>
    %83 = arith.negf %82 : vector<8x128xf32>
    %84 = math.exp %83 : vector<8x128xf32>
    %cst_32 = arith.constant 1.000000e+00 : f32
    %85 = vector.broadcast %cst_32 : f32 to vector<8x128xf32>
    %86 = arith.addf %85, %84 : vector<8x128xf32>
    %87 = arith.divf %85, %86 : vector<8x128xf32>
    %88 = vector.extract_strided_slice %75 {offsets = [0, 256], sizes = [8, 128], strides = [1, 1]} : vector<8x512xf32> to vector<8x128xf32>
    %89 = math.tanh %88 : vector<8x128xf32>
    %90 = vector.extract_strided_slice %75 {offsets = [0, 384], sizes = [8, 128], strides = [1, 1]} : vector<8x512xf32> to vector<8x128xf32>
    %91 = arith.negf %90 : vector<8x128xf32>
    %92 = math.exp %91 : vector<8x128xf32>
    %cst_33 = arith.constant 1.000000e+00 : f32
    %93 = vector.broadcast %cst_33 : f32 to vector<8x128xf32>
    %94 = arith.addf %93, %92 : vector<8x128xf32>
    %95 = arith.divf %93, %94 : vector<8x128xf32>
    %96 = arith.mulf %87, %68 : vector<8x128xf32>
    %97 = arith.mulf %81, %89 : vector<8x128xf32>
    %98 = arith.addf %96, %97 : vector<8x128xf32>
    %99 = math.tanh %98 : vector<8x128xf32>
    %100 = arith.mulf %95, %99 : vector<8x128xf32>
    %c16_34 = arith.constant 16 : index
    %c0_35 = arith.constant 0 : index
    %101 = vector.load %arg9[%c16_34, %c0_35] : memref<64x128xf32, #tpu.memory_space<vmem>>, vector<8x128xf32>
    tpu.vector_store %arg9[%c16_34, %c0_35], %100 {strides = array<i32>} : memref<64x128xf32, #tpu.memory_space<vmem>>, vector<8x128xf32>,
    %102 = arith.truncf %100 : vector<8x128xf32> to vector<8x128xbf16>
    %c24 = arith.constant 24 : index
    %c0_36 = arith.constant 0 : index
    %103 = vector.load %arg8[%c24, %c0_36] : memref<64x512xf32, #tpu.memory_space<vmem>>, vector<8x512xf32>
    %cst_37 = arith.constant dense<0.000000e+00> : vector<8x512xf32>
    %104 = tpu.matmul %102, %10, %cst_37 {dimension_numbers = #tpu.dot_dimension_numbers<[1], [0], [0], [1], [0, 0, 1, 1], [], []>} : vector<8x128xbf16>, vector<128x512xbf16>, vector<8x512xf32> -> vector<8x512xf32>
    %105 = arith.addf %103, %104 : vector<8x512xf32>
    %106 = vector.extract_strided_slice %105 {offsets = [0, 0], sizes = [8, 128], strides = [1, 1]} : vector<8x512xf32> to vector<8x128xf32>
    %107 = arith.negf %106 : vector<8x128xf32>
    %108 = math.exp %107 : vector<8x128xf32>
    %cst_38 = arith.constant 1.000000e+00 : f32
    %109 = vector.broadcast %cst_38 : f32 to vector<8x128xf32>
    %110 = arith.addf %109, %108 : vector<8x128xf32>
    %111 = arith.divf %109, %110 : vector<8x128xf32>
    %112 = vector.extract_strided_slice %105 {offsets = [0, 128], sizes = [8, 128], strides = [1, 1]} : vector<8x512xf32> to vector<8x128xf32>
    %113 = arith.negf %112 : vector<8x128xf32>
    %114 = math.exp %113 : vector<8x128xf32>
    %cst_39 = arith.constant 1.000000e+00 : f32
    %115 = vector.broadcast %cst_39 : f32 to vector<8x128xf32>
    %116 = arith.addf %115, %114 : vector<8x128xf32>
    %117 = arith.divf %115, %116 : vector<8x128xf32>
    %118 = vector.extract_strided_slice %105 {offsets = [0, 256], sizes = [8, 128], strides = [1, 1]} : vector<8x512xf32> to vector<8x128xf32>
    %119 = math.tanh %118 : vector<8x128xf32>
    %120 = vector.extract_strided_slice %105 {offsets = [0, 384], sizes = [8, 128], strides = [1, 1]} : vector<8x512xf32> to vector<8x128xf32>
    %121 = arith.negf %120 : vector<8x128xf32>
    %122 = math.exp %121 : vector<8x128xf32>
    %cst_40 = arith.constant 1.000000e+00 : f32
    %123 = vector.broadcast %cst_40 : f32 to vector<8x128xf32>
    %124 = arith.addf %123, %122 : vector<8x128xf32>
    %125 = arith.divf %123, %124 : vector<8x128xf32>
    %126 = arith.mulf %117, %98 : vector<8x128xf32>
    %127 = arith.mulf %111, %119 : vector<8x128xf32>
    %128 = arith.addf %126, %127 : vector<8x128xf32>
    %129 = math.tanh %128 : vector<8x128xf32>
    %130 = arith.mulf %125, %129 : vector<8x128xf32>
    %c24_41 = arith.constant 24 : index
    %c0_42 = arith.constant 0 : index
    %131 = vector.load %arg9[%c24_41, %c0_42] : memref<64x128xf32, #tpu.memory_space<vmem>>, vector<8x128xf32>
    tpu.vector_store %arg9[%c24_41, %c0_42], %130 {strides = array<i32>} : memref<64x128xf32, #tpu.memory_space<vmem>>, vector<8x128xf32>,
    %132 = arith.truncf %130 : vector<8x128xf32> to vector<8x128xbf16>
    %c32 = arith.constant 32 : index
    %c0_43 = arith.constant 0 : index
    %133 = vector.load %arg8[%c32, %c0_43] : memref<64x512xf32, #tpu.memory_space<vmem>>, vector<8x512xf32>
    %cst_44 = arith.constant dense<0.000000e+00> : vector<8x512xf32>
    %134 = tpu.matmul %132, %10, %cst_44 {dimension_numbers = #tpu.dot_dimension_numbers<[1], [0], [0], [1], [0, 0, 1, 1], [], []>} : vector<8x128xbf16>, vector<128x512xbf16>, vector<8x512xf32> -> vector<8x512xf32>
    %135 = arith.addf %133, %134 : vector<8x512xf32>
    %136 = vector.extract_strided_slice %135 {offsets = [0, 0], sizes = [8, 128], strides = [1, 1]} : vector<8x512xf32> to vector<8x128xf32>
    %137 = arith.negf %136 : vector<8x128xf32>
    %138 = math.exp %137 : vector<8x128xf32>
    %cst_45 = arith.constant 1.000000e+00 : f32
    %139 = vector.broadcast %cst_45 : f32 to vector<8x128xf32>
    %140 = arith.addf %139, %138 : vector<8x128xf32>
    %141 = arith.divf %139, %140 : vector<8x128xf32>
    %142 = vector.extract_strided_slice %135 {offsets = [0, 128], sizes = [8, 128], strides = [1, 1]} : vector<8x512xf32> to vector<8x128xf32>
    %143 = arith.negf %142 : vector<8x128xf32>
    %144 = math.exp %143 : vector<8x128xf32>
    %cst_46 = arith.constant 1.000000e+00 : f32
    %145 = vector.broadcast %cst_46 : f32 to vector<8x128xf32>
    %146 = arith.addf %145, %144 : vector<8x128xf32>
    %147 = arith.divf %145, %146 : vector<8x128xf32>
    %148 = vector.extract_strided_slice %135 {offsets = [0, 256], sizes = [8, 128], strides = [1, 1]} : vector<8x512xf32> to vector<8x128xf32>
    %149 = math.tanh %148 : vector<8x128xf32>
    %150 = vector.extract_strided_slice %135 {offsets = [0, 384], sizes = [8, 128], strides = [1, 1]} : vector<8x512xf32> to vector<8x128xf32>
    %151 = arith.negf %150 : vector<8x128xf32>
    %152 = math.exp %151 : vector<8x128xf32>
    %cst_47 = arith.constant 1.000000e+00 : f32
    %153 = vector.broadcast %cst_47 : f32 to vector<8x128xf32>
    %154 = arith.addf %153, %152 : vector<8x128xf32>
    %155 = arith.divf %153, %154 : vector<8x128xf32>
    %156 = arith.mulf %147, %128 : vector<8x128xf32>
    %157 = arith.mulf %141, %149 : vector<8x128xf32>
    %158 = arith.addf %156, %157 : vector<8x128xf32>
    %159 = math.tanh %158 : vector<8x128xf32>
    %160 = arith.mulf %155, %159 : vector<8x128xf32>
    %c32_48 = arith.constant 32 : index
    %c0_49 = arith.constant 0 : index
    %161 = vector.load %arg9[%c32_48, %c0_49] : memref<64x128xf32, #tpu.memory_space<vmem>>, vector<8x128xf32>
    tpu.vector_store %arg9[%c32_48, %c0_49], %160 {strides = array<i32>} : memref<64x128xf32, #tpu.memory_space<vmem>>, vector<8x128xf32>,
    %162 = arith.truncf %160 : vector<8x128xf32> to vector<8x128xbf16>
    %c40 = arith.constant 40 : index
    %c0_50 = arith.constant 0 : index
    %163 = vector.load %arg8[%c40, %c0_50] : memref<64x512xf32, #tpu.memory_space<vmem>>, vector<8x512xf32>
    %cst_51 = arith.constant dense<0.000000e+00> : vector<8x512xf32>
    %164 = tpu.matmul %162, %10, %cst_51 {dimension_numbers = #tpu.dot_dimension_numbers<[1], [0], [0], [1], [0, 0, 1, 1], [], []>} : vector<8x128xbf16>, vector<128x512xbf16>, vector<8x512xf32> -> vector<8x512xf32>
    %165 = arith.addf %163, %164 : vector<8x512xf32>
    %166 = vector.extract_strided_slice %165 {offsets = [0, 0], sizes = [8, 128], strides = [1, 1]} : vector<8x512xf32> to vector<8x128xf32>
    %167 = arith.negf %166 : vector<8x128xf32>
    %168 = math.exp %167 : vector<8x128xf32>
    %cst_52 = arith.constant 1.000000e+00 : f32
    %169 = vector.broadcast %cst_52 : f32 to vector<8x128xf32>
    %170 = arith.addf %169, %168 : vector<8x128xf32>
    %171 = arith.divf %169, %170 : vector<8x128xf32>
    %172 = vector.extract_strided_slice %165 {offsets = [0, 128], sizes = [8, 128], strides = [1, 1]} : vector<8x512xf32> to vector<8x128xf32>
    %173 = arith.negf %172 : vector<8x128xf32>
    %174 = math.exp %173 : vector<8x128xf32>
    %cst_53 = arith.constant 1.000000e+00 : f32
    %175 = vector.broadcast %cst_53 : f32 to vector<8x128xf32>
    %176 = arith.addf %175, %174 : vector<8x128xf32>
    %177 = arith.divf %175, %176 : vector<8x128xf32>
    %178 = vector.extract_strided_slice %165 {offsets = [0, 256], sizes = [8, 128], strides = [1, 1]} : vector<8x512xf32> to vector<8x128xf32>
    %179 = math.tanh %178 : vector<8x128xf32>
    %180 = vector.extract_strided_slice %165 {offsets = [0, 384], sizes = [8, 128], strides = [1, 1]} : vector<8x512xf32> to vector<8x128xf32>
    %181 = arith.negf %180 : vector<8x128xf32>
    %182 = math.exp %181 : vector<8x128xf32>
    %cst_54 = arith.constant 1.000000e+00 : f32
    %183 = vector.broadcast %cst_54 : f32 to vector<8x128xf32>
    %184 = arith.addf %183, %182 : vector<8x128xf32>
    %185 = arith.divf %183, %184 : vector<8x128xf32>
    %186 = arith.mulf %177, %158 : vector<8x128xf32>
    %187 = arith.mulf %171, %179 : vector<8x128xf32>
    %188 = arith.addf %186, %187 : vector<8x128xf32>
    %189 = math.tanh %188 : vector<8x128xf32>
    %190 = arith.mulf %185, %189 : vector<8x128xf32>
    %c40_55 = arith.constant 40 : index
    %c0_56 = arith.constant 0 : index
    %191 = vector.load %arg9[%c40_55, %c0_56] : memref<64x128xf32, #tpu.memory_space<vmem>>, vector<8x128xf32>
    tpu.vector_store %arg9[%c40_55, %c0_56], %190 {strides = array<i32>} : memref<64x128xf32, #tpu.memory_space<vmem>>, vector<8x128xf32>,
    %192 = arith.truncf %190 : vector<8x128xf32> to vector<8x128xbf16>
    %c48 = arith.constant 48 : index
    %c0_57 = arith.constant 0 : index
    %193 = vector.load %arg8[%c48, %c0_57] : memref<64x512xf32, #tpu.memory_space<vmem>>, vector<8x512xf32>
    %cst_58 = arith.constant dense<0.000000e+00> : vector<8x512xf32>
    %194 = tpu.matmul %192, %10, %cst_58 {dimension_numbers = #tpu.dot_dimension_numbers<[1], [0], [0], [1], [0, 0, 1, 1], [], []>} : vector<8x128xbf16>, vector<128x512xbf16>, vector<8x512xf32> -> vector<8x512xf32>
    %195 = arith.addf %193, %194 : vector<8x512xf32>
    %196 = vector.extract_strided_slice %195 {offsets = [0, 0], sizes = [8, 128], strides = [1, 1]} : vector<8x512xf32> to vector<8x128xf32>
    %197 = arith.negf %196 : vector<8x128xf32>
    %198 = math.exp %197 : vector<8x128xf32>
    %cst_59 = arith.constant 1.000000e+00 : f32
    %199 = vector.broadcast %cst_59 : f32 to vector<8x128xf32>
    %200 = arith.addf %199, %198 : vector<8x128xf32>
    %201 = arith.divf %199, %200 : vector<8x128xf32>
    %202 = vector.extract_strided_slice %195 {offsets = [0, 128], sizes = [8, 128], strides = [1, 1]} : vector<8x512xf32> to vector<8x128xf32>
    %203 = arith.negf %202 : vector<8x128xf32>
    %204 = math.exp %203 : vector<8x128xf32>
    %cst_60 = arith.constant 1.000000e+00 : f32
    %205 = vector.broadcast %cst_60 : f32 to vector<8x128xf32>
    %206 = arith.addf %205, %204 : vector<8x128xf32>
    %207 = arith.divf %205, %206 : vector<8x128xf32>
    %208 = vector.extract_strided_slice %195 {offsets = [0, 256], sizes = [8, 128], strides = [1, 1]} : vector<8x512xf32> to vector<8x128xf32>
    %209 = math.tanh %208 : vector<8x128xf32>
    %210 = vector.extract_strided_slice %195 {offsets = [0, 384], sizes = [8, 128], strides = [1, 1]} : vector<8x512xf32> to vector<8x128xf32>
    %211 = arith.negf %210 : vector<8x128xf32>
    %212 = math.exp %211 : vector<8x128xf32>
    %cst_61 = arith.constant 1.000000e+00 : f32
    %213 = vector.broadcast %cst_61 : f32 to vector<8x128xf32>
    %214 = arith.addf %213, %212 : vector<8x128xf32>
    %215 = arith.divf %213, %214 : vector<8x128xf32>
    %216 = arith.mulf %207, %188 : vector<8x128xf32>
    %217 = arith.mulf %201, %209 : vector<8x128xf32>
    %218 = arith.addf %216, %217 : vector<8x128xf32>
    %219 = math.tanh %218 : vector<8x128xf32>
    %220 = arith.mulf %215, %219 : vector<8x128xf32>
    %c48_62 = arith.constant 48 : index
    %c0_63 = arith.constant 0 : index
    %221 = vector.load %arg9[%c48_62, %c0_63] : memref<64x128xf32, #tpu.memory_space<vmem>>, vector<8x128xf32>
    tpu.vector_store %arg9[%c48_62, %c0_63], %220 {strides = array<i32>} : memref<64x128xf32, #tpu.memory_space<vmem>>, vector<8x128xf32>,
    %222 = arith.truncf %220 : vector<8x128xf32> to vector<8x128xbf16>
    %c56 = arith.constant 56 : index
    %c0_64 = arith.constant 0 : index
    %223 = vector.load %arg8[%c56, %c0_64] : memref<64x512xf32, #tpu.memory_space<vmem>>, vector<8x512xf32>
    %cst_65 = arith.constant dense<0.000000e+00> : vector<8x512xf32>
    %224 = tpu.matmul %222, %10, %cst_65 {dimension_numbers = #tpu.dot_dimension_numbers<[1], [0], [0], [1], [0, 0, 1, 1], [], []>} : vector<8x128xbf16>, vector<128x512xbf16>, vector<8x512xf32> -> vector<8x512xf32>
    %225 = arith.addf %223, %224 : vector<8x512xf32>
    %226 = vector.extract_strided_slice %225 {offsets = [0, 0], sizes = [8, 128], strides = [1, 1]} : vector<8x512xf32> to vector<8x128xf32>
    %227 = arith.negf %226 : vector<8x128xf32>
    %228 = math.exp %227 : vector<8x128xf32>
    %cst_66 = arith.constant 1.000000e+00 : f32
    %229 = vector.broadcast %cst_66 : f32 to vector<8x128xf32>
    %230 = arith.addf %229, %228 : vector<8x128xf32>
    %231 = arith.divf %229, %230 : vector<8x128xf32>
    %232 = vector.extract_strided_slice %225 {offsets = [0, 128], sizes = [8, 128], strides = [1, 1]} : vector<8x512xf32> to vector<8x128xf32>
    %233 = arith.negf %232 : vector<8x128xf32>
    %234 = math.exp %233 : vector<8x128xf32>
    %cst_67 = arith.constant 1.000000e+00 : f32
    %235 = vector.broadcast %cst_67 : f32 to vector<8x128xf32>
    %236 = arith.addf %235, %234 : vector<8x128xf32>
    %237 = arith.divf %235, %236 : vector<8x128xf32>
    %238 = vector.extract_strided_slice %225 {offsets = [0, 256], sizes = [8, 128], strides = [1, 1]} : vector<8x512xf32> to vector<8x128xf32>
    %239 = math.tanh %238 : vector<8x128xf32>
    %240 = vector.extract_strided_slice %225 {offsets = [0, 384], sizes = [8, 128], strides = [1, 1]} : vector<8x512xf32> to vector<8x128xf32>
    %241 = arith.negf %240 : vector<8x128xf32>
    %242 = math.exp %241 : vector<8x128xf32>
    %cst_68 = arith.constant 1.000000e+00 : f32
    %243 = vector.broadcast %cst_68 : f32 to vector<8x128xf32>
    %244 = arith.addf %243, %242 : vector<8x128xf32>
    %245 = arith.divf %243, %244 : vector<8x128xf32>
    %246 = arith.mulf %237, %218 : vector<8x128xf32>
    %247 = arith.mulf %231, %239 : vector<8x128xf32>
    %248 = arith.addf %246, %247 : vector<8x128xf32>
    %249 = math.tanh %248 : vector<8x128xf32>
    %250 = arith.mulf %245, %249 : vector<8x128xf32>
    %c56_69 = arith.constant 56 : index
    %c0_70 = arith.constant 0 : index
    %251 = vector.load %arg9[%c56_69, %c0_70] : memref<64x128xf32, #tpu.memory_space<vmem>>, vector<8x128xf32>
    tpu.vector_store %arg9[%c56_69, %c0_70], %250 {strides = array<i32>} : memref<64x128xf32, #tpu.memory_space<vmem>>, vector<8x128xf32>,
    %252 = arith.truncf %250 : vector<8x128xf32> to vector<8x128xbf16>
    %c0_71 = arith.constant 0 : index
    %c0_72 = arith.constant 0 : index
    %253 = vector.load %arg10[%c0_71, %c0_72] : memref<8x128xbf16, #tpu.memory_space<vmem>>, vector<8x128xbf16>
    tpu.vector_store %arg10[%c0_71, %c0_72], %252 {strides = array<i32>} : memref<8x128xbf16, #tpu.memory_space<vmem>>, vector<8x128xbf16>,
    %c0_73 = arith.constant 0 : index
    %c0_74 = arith.constant 0 : index
    %254 = vector.load %arg11[%c0_73, %c0_74] : memref<8x128xf32, #tpu.memory_space<vmem>>, vector<8x128xf32>
    tpu.vector_store %arg11[%c0_73, %c0_74], %248 {strides = array<i32>} : memref<8x128xf32, #tpu.memory_space<vmem>>, vector<8x128xf32>,
    %c0_75 = arith.constant 0 : index
    %c0_76 = arith.constant 0 : index
    %255 = vector.load %arg9[%c0_75, %c0_76] : memref<64x128xf32, #tpu.memory_space<vmem>>, vector<64x128xf32>
    %256 = arith.truncf %255 : vector<64x128xf32> to vector<64x128xbf16>
    %c0_77 = arith.constant 0 : index
    %c0_78 = arith.constant 0 : index
    %257 = vector.load %arg4[%c0_77, %c0_78] : memref<128x128xbf16, #tpu.memory_space<vmem>>, vector<128x128xbf16>
    %cst_79 = arith.constant dense<0.000000e+00> : vector<64x128xf32>
    %258 = tpu.matmul %256, %257, %cst_79 {dimension_numbers = #tpu.dot_dimension_numbers<[1], [0], [0], [1], [0, 0, 1, 1], [], []>} : vector<64x128xbf16>, vector<128x128xbf16>, vector<64x128xf32> -> vector<64x128xf32>
    %c0_80 = arith.constant 0 : index
    %c0_81 = arith.constant 0 : index
    %259 = vector.load %arg6[%c0_80, %c0_81] : memref<1x128xf32, #tpu.memory_space<vmem>>, vector<1x128xf32>
    %260 = vector.broadcast %259 : vector<1x128xf32> to vector<64x128xf32>
    %261 = arith.addf %258, %260 : vector<64x128xf32>
    %c0_82 = arith.constant 0 : index
    %c0_83 = arith.constant 0 : index
    %262 = vector.load %arg7[%c0_82, %c0_83] : memref<64x128xf32, #tpu.memory_space<vmem>>, vector<64x128xf32>
    tpu.vector_store %arg7[%c0_82, %c0_83], %261 {strides = array<i32>} : memref<64x128xf32, #tpu.memory_space<vmem>>, vector<64x128xf32>,
    return
  }
  func.func @transform_0(%arg0: i32) -> (i32, i32) {
    %c0_i32 = arith.constant 0 : i32
    %c0_i32_0 = arith.constant 0 : i32
    return %arg0, %c0_i32 : i32, i32
  }
  func.func @transform_1(%arg0: i32) -> (i32, i32) {
    %c0_i32 = arith.constant 0 : i32
    %c0_i32_0 = arith.constant 0 : i32
    %c0_i32_1 = arith.constant 0 : i32
    return %c0_i32, %c0_i32_0 : i32, i32
  }
  func.func @transform_2(%arg0: i32) -> (i32, i32) {
    %c0_i32 = arith.constant 0 : i32
    %c0_i32_0 = arith.constant 0 : i32
    %c0_i32_1 = arith.constant 0 : i32
    return %c0_i32, %c0_i32_0 : i32, i32
  }
  func.func @transform_3(%arg0: i32) -> (i32, i32) {
    %c0_i32 = arith.constant 0 : i32
    %c0_i32_0 = arith.constant 0 : i32
    %c0_i32_1 = arith.constant 0 : i32
    return %c0_i32, %c0_i32_0 : i32, i32
  }
  func.func @transform_4(%arg0: i32) -> (i32, i32) {
    %c0_i32 = arith.constant 0 : i32
    %c0_i32_0 = arith.constant 0 : i32
    %c0_i32_1 = arith.constant 0 : i32
    return %c0_i32, %c0_i32_0 : i32, i32
  }
  func.func @transform_5(%arg0: i32) -> (i32, i32) {
    %c0_i32 = arith.constant 0 : i32
    %c0_i32_0 = arith.constant 0 : i32
    %c0_i32_1 = arith.constant 0 : i32
    return %c0_i32, %c0_i32_0 : i32, i32
  }
  func.func @transform_6(%arg0: i32) -> (i32, i32) {
    %c0_i32 = arith.constant 0 : i32
    %c0_i32_0 = arith.constant 0 : i32
    return %arg0, %c0_i32 : i32, i32
  }
}

</mosaic_0001>

<bundles_post_ra>
// kernel: image_sequence_lstm_forward.1
= control target key start
LH: loop header
LB: loop body
LE: loop exit
PB: predicated region body
PF: predicated region fallthrough
CT: control target
= control target key end

     0   :  { %v2778_v1 = vmov 0   ;;  %vm104_vm0 = vcmask 130048   ;;  %v44_v42 = vlaneseq  ;;  %s2771_s1 = inlined_call_operand.vmem [shape: bf16[16,512], index: 1, kind: input, shape index: {}]   ;;  %s2772_s0 = inlined_call_operand.vmem [shape: bf16[64,16], index: 0, kind: input, shape index: {}]   ;;  %s2773_s2 = inlined_call_operand.vmem [shape: bf16[128,512], index: 2, kind: input, shape index: {}]   ;;  %s2774_s4 = inlined_call_operand.vmem [shape: f32[1,512], index: 4, kind: input, shape index: {}]   ;;  %s2775_s3 = inlined_call_operand.vmem [shape: bf16[128,128], index: 3, kind: input, shape index: {}]   ;;  %s2776_s5 = inlined_call_operand.vmem [shape: f32[1,128], index: 5, kind: input, shape index: {}]   ;;  %s2777_s6 = inlined_call_operand.vmem [shape: f32[64,128], index: 6, kind: output, shape index: {}]  }
   0x1   :  { %v1697_v0 = vld [vmem:[%s2771_s1 + $0xc] ss:$16 sps:$4 sm:$0xff]   ;;  %222 = vmatprep.mubr.bf16.mxu1 %v2778_v1  ;;  %28 = vst [vmem:[#allocation4] sm:$0xf] %v2778_v1  ;;  %149 = vmatprep.mubr.bf16.mxu0 %v2778_v1  ;;  %v1699_v2 = vld [vmem:[%s2771_s1 + $0x8] ss:$16 sps:$4 sm:$0xff]  }
   0x2   :  { %190 = vmatprep.subr.bf16.mxu1 %v1697_v0  ;;  %v1700_v3 = vld [vmem:[%s2772_s0] sm:$0xff]   ;;  %v1707_v9 = vld [vmem:[%s2772_s0 + $0x8] sm:$0xff]   ;;  %v1714_v16 = vld [vmem:[%s2772_s0 + $0x10] sm:$0xff]   ;;  %v45_v43 = vshrl.u32 %v44_v42, 7 }
   0x3   :  { %191 = vmatpush1.bf16.msra.mxu1 %v1699_v2  ;;  %v1974_v4 = vld [vmem:[%s2773_s2 + $0x4] ss:$16 sps:$4 sm:$0xff]   ;;  %v1979_v5 = vld [vmem:[%s2773_s2] ss:$16 sps:$4 sm:$0xff]   ;;  %v1721_v21 = vld [vmem:[%s2772_s0 + $0x18] sm:$0xff]  }
   0x4   :  { %v1984_v6 = vld [vmem:[%s2773_s2 + $0x24] ss:$16 sps:$4 sm:$0xff]   ;;  %493 = vmatprep.subr.bf16.mxu1 %v1974_v4  ;;  %v1992_v7 = vld [vmem:[%s2773_s2 + $0x20] ss:$16 sps:$4 sm:$0xff]   ;;  %v2101_v25 = vld [vmem:[%s2773_s2 + $0xc] ss:$16 sps:$4 sm:$0xff]  }
   0x5   :  { %v1999_v8 = vld [vmem:[%s2773_s2 + $0x44] ss:$16 sps:$4 sm:$0xff]   ;;  %v2008_v10 = vld [vmem:[%s2773_s2 + $0x40] ss:$16 sps:$4 sm:$0xff]   ;;  %v2110_v27 = vld [vmem:[%s2773_s2 + $0x8] ss:$16 sps:$4 sm:$0xff]  }
   0x6   :  { %1591 = vmatmul.mubr.msk.bf16.vlgmr.msra.gmra.mrb[0].mxu1 %vm104_vm0, %v1700_v3  ;;  %v2014_v11 = vld [vmem:[%s2773_s2 + $0x64] ss:$16 sps:$4 sm:$0xff]   ;;  %v2020_v12 = vld [vmem:[%s2773_s2 + $0x60] ss:$16 sps:$4 sm:$0xff]   ;;  %v2117_v28 = vld [vmem:[%s2773_s2 + $0x2c] ss:$16 sps:$4 sm:$0xff]  }
   0x7   :  { %494 = vmatpush1.bf16.msra.mxu1 %v1979_v5  ;;  %232 = vmatprep.mubr.bf16.mxu1 %v2778_v1  ;;  %v1725_v13 = vld [vmem:[%s2771_s1 + $0x4] ss:$16 sps:$4 sm:$0xff]   ;;  %v1727_v14 = vld [vmem:[%s2771_s1] ss:$16 sps:$4 sm:$0xff]   ;;  %v2125_v29 = vld [vmem:[%s2773_s2 + $0x28] ss:$16 sps:$4 sm:$0xff]  }
   0x8   :  { %495 = vmatprep.subr.bf16.mxu1 %v1984_v6  ;;  %v2034_v15 = vld [vmem:[%s2773_s2 + $0x84] ss:$16 sps:$4 sm:$0xff]   ;;  %117 = vmatprep.subr.bf16.mxu0 %v1725_v13  ;;  %v2043_v17 = vld [vmem:[%s2773_s2 + $0x80] ss:$16 sps:$4 sm:$0xff]   ;;  %v2132_v30 = vld [vmem:[%s2773_s2 + $0x4c] ss:$16 sps:$4 sm:$0xff]  }
   0x9   :  { %118 = vmatpush1.bf16.msra.mxu0 %v1727_v14  ;;  %v2050_v18 = vld [vmem:[%s2773_s2 + $0xa4] ss:$16 sps:$4 sm:$0xff]   ;;  %v2059_v19 = vld [vmem:[%s2773_s2 + $0xa0] ss:$16 sps:$4 sm:$0xff]   ;;  %v2141_v31 = vld [vmem:[%s2773_s2 + $0x48] ss:$16 sps:$4 sm:$0xff]  }
   0xa   :  { %609 = vmatprep.subr.bf16.mxu0 %v1974_v4  ;;  %v2066_v20 = vld [vmem:[%s2773_s2 + $0xc4] ss:$16 sps:$4 sm:$0xff]   ;;  %v2078_v22 = vld [vmem:[%s2773_s2 + $0xc0] ss:$16 sps:$4 sm:$0xff]   ;;  %v2148_v32 = vld [vmem:[%s2773_s2 + $0x6c] ss:$16 sps:$4 sm:$0xff]  }
   0xb   :  { %496 = vmatpush1.bf16.msra.mxu1 %v1992_v7  ;;  %v2085_v23 = vld [vmem:[%s2773_s2 + $0xe4] ss:$16 sps:$4 sm:$0xff]   ;;  %v2094_v24 = vld [vmem:[%s2773_s2 + $0xe0] ss:$16 sps:$4 sm:$0xff]   ;;  %v2157_v33 = vld [vmem:[%s2773_s2 + $0x68] ss:$16 sps:$4 sm:$0xff]  }
   0xc   :  { %497 = vmatprep.subr.bf16.mxu1 %v1999_v8  ;;  %1587 = vmatmul.mubr.msk.bf16.vlgmr.msra.gmra.mrb[0].mxu0 %vm104_vm0, %v1700_v3  ;;  %v327_v26 = vld [vmem:[#allocation4] sm:$0xf]  ;;  %v2164_v34 = vld [vmem:[%s2773_s2 + $0x8c] ss:$16 sps:$4 sm:$0xff]   ;;  %v2171_v35 = vld [vmem:[%s2773_s2 + $0x88] ss:$16 sps:$4 sm:$0xff]  }
   0xd   :  { %610 = vmatpush1.bf16.msra.mxu0 %v1979_v5  ;;  %159 = vmatprep.mubr.bf16.mxu0 %v2778_v1  ;;  %v2178_v36 = vld [vmem:[%s2773_s2 + $0xac] ss:$16 sps:$4 sm:$0xff]   ;;  %v2184_v37 = vld [vmem:[%s2773_s2 + $0xa8] ss:$16 sps:$4 sm:$0xff]   ;;  %v54_v44 = vsub.s32 2, %v45_v43  ;;  %v58_v46 = vsub.s32 3, %v45_v43 }
   0xe   :  { %1592 = vmatmul.mubr.msk.bf16.gmra.mrb[4].mxu1 %vm104_vm0, %v1707_v9  ;;  %611 = vmatprep.subr.bf16.mxu0 %v1984_v6  ;;  %v2190_v38 = vld [vmem:[%s2773_s2 + $0xcc] ss:$16 sps:$4 sm:$0xff]   ;;  %v2196_v39 = vld [vmem:[%s2773_s2 + $0xc8] ss:$16 sps:$4 sm:$0xff]   ;;  %v42_v45 = vld [vmem:[%s2774_s4] sm:$0xf] }
   0xf   :  { %498 = vmatpush1.bf16.msra.mxu1 %v2008_v10  ;;  %242 = vmatprep.mubr.bf16.mxu1 %v2778_v1  ;;  %v2202_v40 = vld [vmem:[%s2773_s2 + $0xec] ss:$16 sps:$4 sm:$0xff]   ;;  %v2208_v41 = vld [vmem:[%s2773_s2 + $0xe8] ss:$16 sps:$4 sm:$0xff]   ;;  %v2233_v47 = vrot.slane %v42_v45, %v54_v44  ;;  %v2239_v50 = vrot.slane %v42_v45, %v58_v46  ;;  %v46_v63 = vsub.s32 0, %v45_v43  ;;  %v50_v0 = vsub.s32 1, %v45_v43 }
  0x10   :  { %499 = vmatprep.subr.bf16.mxu1 %v2014_v11 }
  0x11   :  { %612 = vmatpush1.bf16.msra.mxu0 %v1992_v7 }
  0x12   :  { %613 = vmatprep.subr.bf16.mxu0 %v1999_v8 }
  0x13   :  { %500 = vmatpush1.bf16.msra.mxu1 %v2020_v12 }
  0x14   :  { %501 = vmatprep.subr.bf16.mxu1 %v2034_v15  ;;  %1588 = vmatmul.mubr.msk.bf16.gmra.mrb[4].mxu0 %vm104_vm0, %v1707_v9  ;;  %v47_v9 = vrot.slane %v42_v45, %v46_v63 }
  0x15   :  { %614 = vmatpush1.bf16.msra.mxu0 %v2008_v10  ;;  %169 = vmatprep.mubr.bf16.mxu0 %v2778_v1 }
  0x16   :  { %1593 = vmatmul.mubr.msk.bf16.gmra.mrb[8].mxu1 %vm104_vm0, %v1714_v16  ;;  %615 = vmatprep.subr.bf16.mxu0 %v2014_v11 }
  0x17   :  { %502 = vmatpush1.bf16.msra.mxu1 %v2043_v17  ;;  %252 = vmatprep.mubr.bf16.mxu1 %v2778_v1 }
  0x18   :  { %503 = vmatprep.subr.bf16.mxu1 %v2050_v18 }
  0x19   :  { %616 = vmatpush1.bf16.msra.mxu0 %v2020_v12 }
  0x1a   :  { %617 = vmatprep.subr.bf16.mxu0 %v2034_v15 }
  0x1b   :  { %504 = vmatpush1.bf16.msra.mxu1 %v2059_v19 }
  0x1c   :  { %505 = vmatprep.subr.bf16.mxu1 %v2066_v20  ;;  %1589 = vmatmul.mubr.msk.bf16.gmra.mrb[8].mxu0 %vm104_vm0, %v1714_v16 }
  0x1d   :  { %618 = vmatpush1.bf16.msra.mxu0 %v2043_v17  ;;  %179 = vmatprep.mubr.bf16.mxu0 %v2778_v1 }
  0x1e   :  { %1594 = vmatmul.mubr.msk.bf16.gmra.mrb[12].mxu1 %vm104_vm0, %v1721_v21  ;;  %619 = vmatprep.subr.bf16.mxu0 %v2050_v18 }
  0x1f   :  { %506 = vmatpush1.bf16.msra.mxu1 %v2078_v22  ;;  %525 = vmatprep.mubr.bf16.mxu1 %v2778_v1 }
  0x20   :  { %507 = vmatprep.subr.bf16.mxu1 %v2085_v23 }
  0x21   :  { %620 = vmatpush1.bf16.msra.mxu0 %v2059_v19 }
  0x22   :  { %621 = vmatprep.subr.bf16.mxu0 %v2066_v20 }
  0x23   :  { %508 = vmatpush1.bf16.msra.mxu1 %v2094_v24 }
  0x24   :  { %534 = vmatprep.subr.bf16.mxu1 %v2101_v25  ;;  %1590 = vmatmul.mubr.msk.bf16.gmra.mrb[12].mxu0 %vm104_vm0, %v1721_v21  ;;  %v51_v21 = vrot.slane %v42_v45, %v50_v0 }
  0x25   :  { %622 = vmatpush1.bf16.msra.mxu0 %v2078_v22  ;;  %641 = vmatprep.mubr.bf16.mxu0 %v2778_v1 }
  0x26   :  { %526 = vmatmul.mubr.bf16.vlgmr.msra.gmra.mrb[16].mxu1 %v327_v26  ;;  %623 = vmatprep.subr.bf16.mxu0 %v2085_v23 }
  0x27   :  { %535 = vmatpush1.bf16.msra.mxu1 %v2110_v27  ;;  %566 = vmatprep.mubr.bf16.mxu1 %v2778_v1 }
  0x28   :  { %536 = vmatprep.subr.bf16.mxu1 %v2117_v28 }
  0x29   :  { %624 = vmatpush1.bf16.msra.mxu0 %v2094_v24 }
  0x2a   :  { %725 = vmatprep.subr.bf16.mxu0 %v1974_v4 }
  0x2b   :  { %537 = vmatpush1.bf16.msra.mxu1 %v2125_v29 }
  0x2c   :  { %538 = vmatprep.subr.bf16.mxu1 %v2132_v30 }
  0x2f   :  { %539 = vmatpush1.bf16.msra.mxu1 %v2141_v31 }
  0x30   :  { %540 = vmatprep.subr.bf16.mxu1 %v2148_v32 }
  0x33   :  { %541 = vmatpush1.bf16.msra.mxu1 %v2157_v33 }
  0x34   :  { %542 = vmatprep.subr.bf16.mxu1 %v2164_v34 }
  0x37   :  { %543 = vmatpush1.bf16.msra.mxu1 %v2171_v35 }
  0x38   :  { %544 = vmatprep.subr.bf16.mxu1 %v2178_v36 }
  0x3b   :  { %545 = vmatpush1.bf16.msra.mxu1 %v2184_v37 }
  0x3c   :  { %546 = vmatprep.subr.bf16.mxu1 %v2190_v38 }
  0x3f   :  { %547 = vmatpush1.bf16.msra.mxu1 %v2196_v39 }
  0x40   :  { %548 = vmatprep.subr.bf16.mxu1 %v2202_v40 }
  0x43   :  { %549 = vmatpush1.bf16.msra.mxu1 %v2208_v41 }
  0x44   :  { %650 = vmatprep.subr.bf16.mxu1 %v2101_v25 }
  0x46   :  { %567 = vmatmul.mubr.bf16.vlgmr.msra.gmra.mrb[20].mxu1 %v327_v26 }
  0x47   :  { %651 = vmatpush1.bf16.msra.mxu1 %v2110_v27  ;;  %682 = vmatprep.mubr.bf16.mxu1 %v2778_v1 }
  0x48   :  { %652 = vmatprep.subr.bf16.mxu1 %v2117_v28 }
  0x4b   :  { %653 = vmatpush1.bf16.msra.mxu1 %v2125_v29 }
  0x4c   :  { %654 = vmatprep.subr.bf16.mxu1 %v2132_v30 }
  0x4f   :  { %655 = vmatpush1.bf16.msra.mxu1 %v2141_v31 }
  0x50   :  { %656 = vmatprep.subr.bf16.mxu1 %v2148_v32 }
  0x53   :  { %657 = vmatpush1.bf16.msra.mxu1 %v2157_v33 }
  0x54   :  { %658 = vmatprep.subr.bf16.mxu1 %v2164_v34 }
  0x57   :  { %659 = vmatpush1.bf16.msra.mxu1 %v2171_v35 }
  0x58   :  { %660 = vmatprep.subr.bf16.mxu1 %v2178_v36 }
  0x5b   :  { %661 = vmatpush1.bf16.msra.mxu1 %v2184_v37 }
  0x5c   :  { %662 = vmatprep.subr.bf16.mxu1 %v2190_v38 }
  0x5f   :  { %663 = vmatpush1.bf16.msra.mxu1 %v2196_v39 }
  0x60   :  { %664 = vmatprep.subr.bf16.mxu1 %v2202_v40 }
  0x63   :  { %665 = vmatpush1.bf16.msra.mxu1 %v2208_v41 }
  0x64   :  { %766 = vmatprep.subr.bf16.mxu1 %v2101_v25 }
  0xd9   :  { %v2235_v48 = vpop.f32.mrb[0].mxu1 }
  0xda   :  { %v2237_v49 = vpop.f32.mrb[1].mxu1 }
  0xdb   :  { %v228_v51 = vpop.f32.mrb[2].mxu1 }
  0xdc   :  { %v2242_v52 = vadd.f32 %v228_v51, %v2233_v47  ;;  %v230_v53 = vpop.f32.mrb[3].mxu1 }
  0xdd   :  { %v2245_v54 = vadd.f32 %v230_v53, %v2239_v50 }
  0xdf   :  { %v151_v2 = vpop.f32.mrb[0].mxu0 }
  0xe0   :  { %v153_v13 = vpop.f32.mrb[1].mxu0 }
  0xe1   :  { %v234_v55 = vpop.f32.mrb[4].mxu1  ;;  %v155_v26 = vpop.f32.mrb[2].mxu0 }
  0xe2   :  { %v2248_v56 = vadd.f32 %v234_v55, %v2233_v47  ;;  %v236_v57 = vpop.f32.mrb[5].mxu1  ;;  %v2265_v46 = vadd.f32 %v155_v26, %v47_v9  ;;  %v157_v51 = vpop.f32.mrb[3].mxu0 }
  0xe3   :  { %v2251_v58 = vadd.f32 %v236_v57, %v2239_v50  ;;  %v238_v59 = vpop.f32.mrb[6].mxu1  ;;  %v2270_v55 = vadd.f32 %v157_v51, %v51_v21 }
  0xe4   :  { %v2254_v60 = vadd.f32 %v238_v59, %v2233_v47  ;;  %v240_v61 = vpop.f32.mrb[7].mxu1 }
  0xe5   :  { %2780 = vst [vmem:[#allocation6_spill] sm:$0xff] %v2251_v58  ;;  %v2257_v62 = vadd.f32 %v240_v61, %v2239_v50 }
  0xe6   :  { %2781 = vst [vmem:[#allocation7_spill] sm:$0xff] %v2254_v60 }
  0xe7   :  { %2782 = vst [vmem:[#allocation8_spill] sm:$0xff] %v2257_v62  ;;  %v161_v59 = vpop.f32.mrb[4].mxu0 }
  0xe8   :  { %v2275_v45 = vadd.f32 %v161_v59, %v47_v9  ;;  %v163_v63 = vpop.f32.mrb[5].mxu0 }
  0xe9   :  { %v244_v3 = vpop.f32.mrb[8].mxu1  ;;  %v165_v26 = vpop.f32.mrb[6].mxu0 }
  0xea   :  { %v2260_v14 = vadd.f32 %v244_v3, %v2233_v47  ;;  %v246_v16 = vpop.f32.mrb[9].mxu1  ;;  %v2285_v1 = vadd.f32 %v165_v26, %v47_v9 }
  0xeb   :  { %v2263_v42 = vadd.f32 %v246_v16, %v2239_v50  ;;  %v248_v44 = vpop.f32.mrb[10].mxu1  ;;  %v2280_v16 = vadd.f32 %v163_v63, %v51_v21  ;;  %v154_v63 = vadd.f32 %v153_v13, %v51_v21 }
  0xec   :  { %2783 = vst [vmem:[#allocation9_spill] sm:$0xff] %v2260_v14  ;;  %v2268_v53 = vadd.f32 %v248_v44, %v2233_v47  ;;  %v250_v43 = vpop.f32.mrb[11].mxu1  ;;  %2789 = vst [vmem:[#allocation15_spill] sm:$0xff] %v2285_v1 }
  0xed   :  { %2784 = vst [vmem:[#allocation10_spill] sm:$0xff] %v2263_v42  ;;  %v2273_v57 = vadd.f32 %v250_v43, %v2239_v50  ;;  %v167_v43 = vpop.f32.mrb[7].mxu0 }
  0xee   :  { %2785 = vst [vmem:[#allocation11_spill] sm:$0xff] %v2268_v53  ;;  %v2290_v53 = vadd.f32 %v167_v43, %v51_v21 }
  0xef   :  { %2786 = vst [vmem:[#allocation12_spill] sm:$0xff] %v2273_v57  ;;  %v171_v42 = vpop.f32.mrb[8].mxu0 }
  0xf0   :  { %2791 = vst [vmem:[#allocation17_spill] sm:$0xff] %v2290_v53  ;;  %v2295_v62 = vadd.f32 %v171_v42, %v47_v9 }
  0xf1   :  { %v254_v61 = vpop.f32.mrb[12].mxu1 }
  0xf2   :  { %v2278_v0 = vadd.f32 %v254_v61, %v2233_v47  ;;  %v256_v3 = vpop.f32.mrb[13].mxu1  ;;  %2793 = vst [vmem:[#allocation19_spill] sm:$0xff] %v2295_v62 }
  0xf3   :  { %v2283_v44 = vadd.f32 %v256_v3, %v2239_v50  ;;  %v258_v51 = vpop.f32.mrb[14].mxu1  ;;  %v173_v3 = vpop.f32.mrb[9].mxu0 }
  0xf4   :  { %2787 = vst [vmem:[#allocation13_spill] sm:$0xff] %v2278_v0  ;;  %v2288_v57 = vadd.f32 %v258_v51, %v2233_v47  ;;  %v260_v59 = vpop.f32.mrb[15].mxu1  ;;  %v152_v0 = vadd.f32 %v151_v2, %v47_v9  ;;  %v2297_v60 = vadd.f32 %v173_v3, %v51_v21  ;;  %v175_v1 = vpop.f32.mrb[10].mxu0 }
  0xf5   :  { %2788 = vst [vmem:[#allocation14_spill] sm:$0xff] %v2283_v44  ;;  %v2293_v61 = vadd.f32 %v260_v59, %v2239_v50  ;;  %v2299_v58 = vadd.f32 %v175_v1, %v47_v9  ;;  %v177_v43 = vpop.f32.mrb[11].mxu0 }
  0xf6   :  { %2790 = vst [vmem:[#allocation16_spill] sm:$0xff] %v2288_v57  ;;  %v2301_v59 = vadd.f32 %v177_v43, %v51_v21 }
  0xf7   :  { %2792 = vst [vmem:[#allocation18_spill] sm:$0xff] %v2293_v61  ;;  %v181_v2 = vpop.f32.mrb[12].mxu0 }
  0xf8   :  { %v2303_v13 = vadd.f32 %v181_v2, %v47_v9  ;;  %v183_v61 = vpop.f32.mrb[13].mxu0  ;;  %v225_v2 = vadd.f32 %v2235_v48, %v2233_v47 }
  0xf9   :  { %v527_v14 = vpop.f32.mrb[16].mxu1  ;;  %v2305_v42 = vadd.f32 %v183_v61, %v51_v21  ;;  %v185_v62 = vpop.f32.mrb[14].mxu0  ;;  %v227_v61 = vadd.f32 %v2237_v49, %v2239_v50 }
  0xfa   :  { %v575_v44 = vadd.f32 %v527_v14, %v152_v0  ;;  %v529_v26 = vpop.f32.mrb[17].mxu1  ;;  %v2307_v14 = vadd.f32 %v185_v62, %v47_v9  ;;  %v187_v0 = vpop.f32.mrb[15].mxu0 }
  0xfb   :  { %v576_v51 = vadd.f32 %v529_v26, %v154_v63  ;;  %v531_v57 = vpop.f32.mrb[18].mxu1  ;;  %2794 = vst [vmem:[#allocation20_spill] sm:$0xff] %v2305_v42  ;;  %v2309_v3 = vadd.f32 %v187_v0, %v51_v21 }
  0xfc   :  { %v532_v53 = vpop.f32.mrb[19].mxu1  ;;  %v1627_v57 = vmul.f32 -1.442695, %v575_v44 }
  0xfd   :  { %2795 = vst [vmem:[#allocation21_spill] sm:$0xff] %v2309_v3  ;;  %v1628_v63 = vmul.f32 -1.442695, %v576_v51 }
  0xff   :  { %1763 = vpow2.f32 %v1628_v63 }
 0x100   :  { %1765 = vpow2.f32 %v1627_v57 }
 0x109   :  { %v1764_v1 = vpop.eup %1763 }
 0x10a   :  { %v1766_v53 = vpop.eup %1765  ;;  %v588_v26 = vadd.f32 1.0, %v1764_v1 }
 0x10b   :  { %v582_v43 = vadd.f32 1.0, %v1766_v53 }
 0x10c   :  { %1767 = vrcp.f32 %v588_v26 }
 0x10d   :  { %1769 = vrcp.f32 %v582_v43 }
 0x116   :  { %v1768_v63 = vpop.eup %1767 }
 0x117   :  { %v1770_v57 = vpop.eup %1769  ;;  %v598_v53 = vmul.f32 0.0, %v1768_v63 }
 0x119   :  { %v568_v42 = vpop.f32.mrb[20].mxu1 }
 0x11a   :  { %v577_v62 = vadd.f32 %v568_v42, %v225_v2  ;;  %v570_v9 = vpop.f32.mrb[21].mxu1 }
 0x11b   :  { %v578_v21 = vadd.f32 %v570_v9, %v227_v61  ;;  %v572_v51 = vpop.f32.mrb[22].mxu1 }
 0x11c   :  { %1771 = vtanh.f32 %v577_v62  ;;  %v573_v44 = vpop.f32.mrb[23].mxu1 }
 0x11d   :  { %v1629_v0 = vmul.f32 -1.442695, %v578_v21 }
 0x11f   :  { %1773 = vpow2.f32 %v1629_v0 }
 0x126   :  { %v1772_v1 = vpop.eup %1771 }
 0x127   :  { %v599_v3 = vmul.f32 %v1772_v1, %v1770_v57 }
 0x129   :  { %v1774_v47 = vpop.eup %1773  ;;  %v2315_v48 = vadd.f32 %v599_v3, %v598_v53  ;;  %v2796_v3 = vmov 0  }
 0x12a   :  { %v595_v49 = vadd.f32 1.0, %v1774_v47 }
 0x12b   :  { %1775 = vtanh.f32 %v2315_v48 }
 0x12c   :  { %1777 = vrcp.f32 %v595_v49 }
 0x135   :  { %v1776_v50 = vpop.eup %1775 }
 0x136   :  { %v1778_v42 = vpop.eup %1777 }
 0x137   :  { %v2318_v26 = vmul.f32 %v1778_v42, %v1776_v50 }
 0x139   :  { %v604_v43 = vpack.c.bf16 %v2318_v26, %v2318_v26 }
 0x13b   :  { %642 = vmatmul.mubr.bf16.vlgmr.msra.gmra.mrb[16].mxu0 %v604_v43  ;;  %683 = vmatmul.mubr.bf16.vlgmr.msra.gmra.mrb[24].mxu1 %v604_v43 }
 0x13c   :  { %726 = vmatpush1.bf16.msra.mxu0 %v1979_v5  ;;  %767 = vmatpush1.bf16.msra.mxu1 %v2110_v27 }
 0x13d   :  { %727 = vmatprep.subr.bf16.mxu0 %v1984_v6  ;;  %768 = vmatprep.subr.bf16.mxu1 %v2117_v28 }
 0x13e   :  { %757 = vmatprep.mubr.bf16.mxu0 %v2796_v3  ;;  %798 = vmatprep.mubr.bf16.mxu1 %v2796_v3 }
 0x140   :  { %728 = vmatpush1.bf16.msra.mxu0 %v1992_v7  ;;  %769 = vmatpush1.bf16.msra.mxu1 %v2125_v29 }
 0x141   :  { %729 = vmatprep.subr.bf16.mxu0 %v1999_v8  ;;  %770 = vmatprep.subr.bf16.mxu1 %v2132_v30 }
 0x144   :  { %730 = vmatpush1.bf16.msra.mxu0 %v2008_v10  ;;  %771 = vmatpush1.bf16.msra.mxu1 %v2141_v31 }
 0x145   :  { %731 = vmatprep.subr.bf16.mxu0 %v2014_v11  ;;  %772 = vmatprep.subr.bf16.mxu1 %v2148_v32 }
 0x148   :  { %732 = vmatpush1.bf16.msra.mxu0 %v2020_v12  ;;  %773 = vmatpush1.bf16.msra.mxu1 %v2157_v33 }
 0x149   :  { %733 = vmatprep.subr.bf16.mxu0 %v2034_v15  ;;  %774 = vmatprep.subr.bf16.mxu1 %v2164_v34 }
 0x14c   :  { %734 = vmatpush1.bf16.msra.mxu0 %v2043_v17  ;;  %775 = vmatpush1.bf16.msra.mxu1 %v2171_v35 }
 0x14d   :  { %735 = vmatprep.subr.bf16.mxu0 %v2050_v18  ;;  %776 = vmatprep.subr.bf16.mxu1 %v2178_v36 }
 0x150   :  { %736 = vmatpush1.bf16.msra.mxu0 %v2059_v19  ;;  %777 = vmatpush1.bf16.msra.mxu1 %v2184_v37 }
 0x151   :  { %737 = vmatprep.subr.bf16.mxu0 %v2066_v20  ;;  %778 = vmatprep.subr.bf16.mxu1 %v2190_v38 }
 0x154   :  { %738 = vmatpush1.bf16.msra.mxu0 %v2078_v22  ;;  %779 = vmatpush1.bf16.msra.mxu1 %v2196_v39 }
 0x155   :  { %739 = vmatprep.subr.bf16.mxu0 %v2085_v23  ;;  %780 = vmatprep.subr.bf16.mxu1 %v2202_v40 }
 0x158   :  { %740 = vmatpush1.bf16.msra.mxu0 %v2094_v24  ;;  %781 = vmatpush1.bf16.msra.mxu1 %v2208_v41 }
 0x159   :  { %841 = vmatprep.subr.bf16.mxu0 %v1974_v4  ;;  %882 = vmatprep.subr.bf16.mxu1 %v2101_v25 }
 0x20e   :  { %v643_v2 = vpop.f32.mrb[16].mxu0  ;;  %v684_v61 = vpop.f32.mrb[24].mxu1 }
 0x20f   :  { %v691_v62 = vadd.f32 %v643_v2, %v2265_v46  ;;  %v693_v9 = vadd.f32 %v684_v61, %v2242_v52  ;;  %v645_v21 = vpop.f32.mrb[17].mxu0  ;;  %v686_v51 = vpop.f32.mrb[25].mxu1 }
 0x210   :  { %v692_v44 = vadd.f32 %v645_v21, %v2270_v55  ;;  %v694_v0 = vadd.f32 %v686_v51, %v2245_v54  ;;  %v647_v63 = vpop.f32.mrb[18].mxu0  ;;  %v688_v57 = vpop.f32.mrb[26].mxu1 }
 0x211   :  { %v1630_v1 = vmul.f32 -1.442695, %v691_v62  ;;  %v648_v53 = vpop.f32.mrb[19].mxu0  ;;  %v689_v47 = vpop.f32.mrb[27].mxu1 }
 0x212   :  { %v1631_v49 = vmul.f32 -1.442695, %v692_v44  ;;  %v1632_v50 = vmul.f32 -1.442695, %v694_v0 }
 0x213   :  { %1779 = vpow2.f32 %v1630_v1 }
 0x214   :  { %1781 = vpow2.f32 %v1631_v49 }
 0x215   :  { %1783 = vpow2.f32 %v1632_v50 }
 0x216   :  { %1785 = vtanh.f32 %v693_v9 }
 0x21d   :  { %v1780_v42 = vpop.eup %1779 }
 0x21e   :  { %v1782_v43 = vpop.eup %1781  ;;  %v698_v46 = vadd.f32 1.0, %v1780_v42 }
 0x21f   :  { %v704_v52 = vadd.f32 1.0, %v1782_v43  ;;  %v1784_v55 = vpop.eup %1783  ;;  %v2797_v43 = vld [vmem:[#allocation6_spill] sm:$0xff] }
 0x220   :  { %1787 = vrcp.f32 %v698_v46  ;;  %v1786_v2 = vpop.eup %1785  ;;  %v711_v62 = vadd.f32 1.0, %v1784_v55 }
 0x221   :  { %1789 = vrcp.f32 %v704_v52 }
 0x222   :  { %1791 = vrcp.f32 %v711_v62 }
 0x22a   :  { %v1788_v54 = vpop.eup %1787 }
 0x22b   :  { %v1790_v61 = vpop.eup %1789  ;;  %v715_v21 = vmul.f32 %v1788_v54, %v1786_v2 }
 0x22c   :  { %v714_v51 = vmul.f32 %v1790_v61, %v2315_v48  ;;  %v1792_v0 = vpop.eup %1791 }
 0x22e   :  { %v2361_v44 = vadd.f32 %v715_v21, %v714_v51 }
 0x230   :  { %1793 = vtanh.f32 %v2361_v44 }
 0x23a   :  { %v1794_v63 = vpop.eup %1793 }
 0x23b   :  { %v2364_v57 = vmul.f32 %v1794_v63, %v1792_v0 }
 0x23d   :  { %v720_v9 = vpack.c.bf16 %v2364_v57, %v2364_v57 }
 0x23f   :  { %758 = vmatmul.mubr.bf16.vlgmr.msra.gmra.mrb[20].mxu0 %v720_v9  ;;  %799 = vmatmul.mubr.bf16.vlgmr.msra.gmra.mrb[28].mxu1 %v720_v9 }
 0x240   :  { %842 = vmatpush1.bf16.msra.mxu0 %v1979_v5  ;;  %883 = vmatpush1.bf16.msra.mxu1 %v2110_v27 }
 0x241   :  { %843 = vmatprep.subr.bf16.mxu0 %v1984_v6  ;;  %884 = vmatprep.subr.bf16.mxu1 %v2117_v28 }
 0x242   :  { %873 = vmatprep.mubr.bf16.mxu0 %v2796_v3  ;;  %914 = vmatprep.mubr.bf16.mxu1 %v2796_v3 }
 0x244   :  { %844 = vmatpush1.bf16.msra.mxu0 %v1992_v7  ;;  %885 = vmatpush1.bf16.msra.mxu1 %v2125_v29 }
 0x245   :  { %845 = vmatprep.subr.bf16.mxu0 %v1999_v8  ;;  %886 = vmatprep.subr.bf16.mxu1 %v2132_v30 }
 0x248   :  { %846 = vmatpush1.bf16.msra.mxu0 %v2008_v10  ;;  %887 = vmatpush1.bf16.msra.mxu1 %v2141_v31 }
 0x249   :  { %847 = vmatprep.subr.bf16.mxu0 %v2014_v11  ;;  %888 = vmatprep.subr.bf16.mxu1 %v2148_v32 }
 0x24c   :  { %848 = vmatpush1.bf16.msra.mxu0 %v2020_v12  ;;  %889 = vmatpush1.bf16.msra.mxu1 %v2157_v33 }
 0x24d   :  { %849 = vmatprep.subr.bf16.mxu0 %v2034_v15  ;;  %890 = vmatprep.subr.bf16.mxu1 %v2164_v34 }
 0x250   :  { %850 = vmatpush1.bf16.msra.mxu0 %v2043_v17  ;;  %891 = vmatpush1.bf16.msra.mxu1 %v2171_v35 }
 0x251   :  { %851 = vmatprep.subr.bf16.mxu0 %v2050_v18  ;;  %892 = vmatprep.subr.bf16.mxu1 %v2178_v36 }
 0x254   :  { %852 = vmatpush1.bf16.msra.mxu0 %v2059_v19  ;;  %893 = vmatpush1.bf16.msra.mxu1 %v2184_v37 }
 0x255   :  { %853 = vmatprep.subr.bf16.mxu0 %v2066_v20  ;;  %894 = vmatprep.subr.bf16.mxu1 %v2190_v38 }
 0x258   :  { %854 = vmatpush1.bf16.msra.mxu0 %v2078_v22  ;;  %895 = vmatpush1.bf16.msra.mxu1 %v2196_v39 }
 0x259   :  { %855 = vmatprep.subr.bf16.mxu0 %v2085_v23  ;;  %896 = vmatprep.subr.bf16.mxu1 %v2202_v40 }
 0x25c   :  { %856 = vmatpush1.bf16.msra.mxu0 %v2094_v24  ;;  %897 = vmatpush1.bf16.msra.mxu1 %v2208_v41 }
 0x25d   :  { %957 = vmatprep.subr.bf16.mxu0 %v1974_v4  ;;  %998 = vmatprep.subr.bf16.mxu1 %v2101_v25 }
 0x312   :  { %v759_v48 = vpop.f32.mrb[20].mxu0  ;;  %v800_v1 = vpop.f32.mrb[28].mxu1 }
 0x313   :  { %v807_v53 = vadd.f32 %v759_v48, %v2275_v45  ;;  %v809_v47 = vadd.f32 %v800_v1, %v2248_v56  ;;  %v761_v49 = vpop.f32.mrb[21].mxu0  ;;  %v802_v50 = vpop.f32.mrb[29].mxu1 }
 0x314   :  { %v808_v42 = vadd.f32 %v761_v49, %v2280_v16  ;;  %v810_v46 = vadd.f32 %v802_v50, %v2797_v43  ;;  %v763_v52 = vpop.f32.mrb[22].mxu0  ;;  %v804_v55 = vpop.f32.mrb[30].mxu1 }
 0x315   :  { %v1633_v2 = vmul.f32 -1.442695, %v807_v53  ;;  %v764_v54 = vpop.f32.mrb[23].mxu0  ;;  %v805_v61 = vpop.f32.mrb[31].mxu1  ;;  %v2798_v55 = vld [vmem:[#allocation15_spill] sm:$0xff] }
 0x316   :  { %v1634_v21 = vmul.f32 -1.442695, %v808_v42  ;;  %v1635_v62 = vmul.f32 -1.442695, %v810_v46  ;;  %v2799_v54 = vld [vmem:[#allocation7_spill] sm:$0xff] }
 0x317   :  { %1795 = vpow2.f32 %v1633_v2 }
 0x318   :  { %1797 = vpow2.f32 %v1634_v21 }
 0x319   :  { %1799 = vpow2.f32 %v1635_v62 }
 0x31a   :  { %1801 = vtanh.f32 %v809_v47 }
 0x321   :  { %v1796_v51 = vpop.eup %1795 }
 0x322   :  { %v1798_v0 = vpop.eup %1797  ;;  %v814_v45 = vadd.f32 1.0, %v1796_v51  ;;  %v2800_v51 = vld [vmem:[#allocation17_spill] sm:$0xff] }
 0x323   :  { %v820_v56 = vadd.f32 1.0, %v1798_v0  ;;  %v1800_v16 = vpop.eup %1799 }
 0x324   :  { %1803 = vrcp.f32 %v814_v45  ;;  %v1802_v63 = vpop.eup %1801  ;;  %v827_v53 = vadd.f32 1.0, %v1800_v16  ;;  %v2801_v45 = vld [vmem:[#allocation8_spill] sm:$0xff] }
 0x325   :  { %1805 = vrcp.f32 %v820_v56 }
 0x326   :  { %1807 = vrcp.f32 %v827_v53 }
 0x32e   :  { %v1804_v9 = vpop.eup %1803 }
 0x32f   :  { %v1806_v48 = vpop.eup %1805  ;;  %v831_v1 = vmul.f32 %v1804_v9, %v1802_v63 }
 0x330   :  { %v830_v49 = vmul.f32 %v1806_v48, %v2361_v44  ;;  %v1808_v42 = vpop.eup %1807 }
 0x332   :  { %v2407_v50 = vadd.f32 %v831_v1, %v830_v49 }
 0x334   :  { %1809 = vtanh.f32 %v2407_v50 }
 0x33e   :  { %v1810_v43 = vpop.eup %1809 }
 0x33f   :  { %v2410_v46 = vmul.f32 %v1810_v43, %v1808_v42 }
 0x341   :  { %v836_v47 = vpack.c.bf16 %v2410_v46, %v2410_v46 }
 0x343   :  { %874 = vmatmul.mubr.bf16.vlgmr.msra.gmra.mrb[24].mxu0 %v836_v47  ;;  %915 = vmatmul.mubr.bf16.vlgmr.msra.gmra.mrb[32].mxu1 %v836_v47 }
 0x344   :  { %958 = vmatpush1.bf16.msra.mxu0 %v1979_v5  ;;  %999 = vmatpush1.bf16.msra.mxu1 %v2110_v27 }
 0x345   :  { %959 = vmatprep.subr.bf16.mxu0 %v1984_v6  ;;  %1000 = vmatprep.subr.bf16.mxu1 %v2117_v28 }
 0x346   :  { %989 = vmatprep.mubr.bf16.mxu0 %v2796_v3  ;;  %1030 = vmatprep.mubr.bf16.mxu1 %v2796_v3 }
 0x348   :  { %960 = vmatpush1.bf16.msra.mxu0 %v1992_v7  ;;  %1001 = vmatpush1.bf16.msra.mxu1 %v2125_v29 }
 0x349   :  { %961 = vmatprep.subr.bf16.mxu0 %v1999_v8  ;;  %1002 = vmatprep.subr.bf16.mxu1 %v2132_v30 }
 0x34c   :  { %962 = vmatpush1.bf16.msra.mxu0 %v2008_v10  ;;  %1003 = vmatpush1.bf16.msra.mxu1 %v2141_v31 }
 0x34d   :  { %963 = vmatprep.subr.bf16.mxu0 %v2014_v11  ;;  %1004 = vmatprep.subr.bf16.mxu1 %v2148_v32 }
 0x350   :  { %964 = vmatpush1.bf16.msra.mxu0 %v2020_v12  ;;  %1005 = vmatpush1.bf16.msra.mxu1 %v2157_v33 }
 0x351   :  { %965 = vmatprep.subr.bf16.mxu0 %v2034_v15  ;;  %1006 = vmatprep.subr.bf16.mxu1 %v2164_v34 }
 0x354   :  { %966 = vmatpush1.bf16.msra.mxu0 %v2043_v17  ;;  %1007 = vmatpush1.bf16.msra.mxu1 %v2171_v35 }
 0x355   :  { %967 = vmatprep.subr.bf16.mxu0 %v2050_v18  ;;  %1008 = vmatprep.subr.bf16.mxu1 %v2178_v36 }
 0x358   :  { %968 = vmatpush1.bf16.msra.mxu0 %v2059_v19  ;;  %1009 = vmatpush1.bf16.msra.mxu1 %v2184_v37 }
 0x359   :  { %969 = vmatprep.subr.bf16.mxu0 %v2066_v20  ;;  %1010 = vmatprep.subr.bf16.mxu1 %v2190_v38 }
 0x35c   :  { %970 = vmatpush1.bf16.msra.mxu0 %v2078_v22  ;;  %1011 = vmatpush1.bf16.msra.mxu1 %v2196_v39 }
 0x35d   :  { %971 = vmatprep.subr.bf16.mxu0 %v2085_v23  ;;  %1012 = vmatprep.subr.bf16.mxu1 %v2202_v40 }
 0x360   :  { %972 = vmatpush1.bf16.msra.mxu0 %v2094_v24  ;;  %1013 = vmatpush1.bf16.msra.mxu1 %v2208_v41 }
 0x361   :  { %1073 = vmatprep.subr.bf16.mxu0 %v1974_v4  ;;  %1114 = vmatprep.subr.bf16.mxu1 %v2101_v25 }
 0x416   :  { %v875_v44 = vpop.f32.mrb[24].mxu0  ;;  %v916_v52 = vpop.f32.mrb[32].mxu1 }
 0x417   :  { %v923_v2 = vadd.f32 %v875_v44, %v2798_v55  ;;  %v925_v61 = vadd.f32 %v916_v52, %v2799_v54  ;;  %v877_v21 = vpop.f32.mrb[25].mxu0  ;;  %v918_v62 = vpop.f32.mrb[33].mxu1 }
 0x418   :  { %v924_v0 = vadd.f32 %v877_v21, %v2800_v51  ;;  %v926_v56 = vadd.f32 %v918_v62, %v2801_v45  ;;  %v879_v16 = vpop.f32.mrb[26].mxu0  ;;  %v920_v63 = vpop.f32.mrb[34].mxu1 }
 0x419   :  { %v1636_v9 = vmul.f32 -1.442695, %v923_v2  ;;  %v880_v48 = vpop.f32.mrb[27].mxu0  ;;  %v921_v1 = vpop.f32.mrb[35].mxu1 }
 0x41a   :  { %v1637_v4 = vmul.f32 -1.442695, %v924_v0  ;;  %v1638_v53 = vmul.f32 -1.442695, %v926_v56 }
 0x41b   :  { %1811 = vpow2.f32 %v1636_v9 }
 0x41c   :  { %1813 = vpow2.f32 %v1637_v4 }
 0x41d   :  { %1815 = vpow2.f32 %v1638_v53 }
 0x41e   :  { %1817 = vtanh.f32 %v925_v61 }
 0x425   :  { %v1812_v49 = vpop.eup %1811 }
 0x426   :  { %v1814_v42 = vpop.eup %1813  ;;  %v930_v43 = vadd.f32 1.0, %v1812_v49 }
 0x427   :  { %v936_v47 = vadd.f32 1.0, %v1814_v42  ;;  %v1816_v44 = vpop.eup %1815 }
 0x428   :  { %1819 = vrcp.f32 %v930_v43  ;;  %v1818_v52 = vpop.eup %1817  ;;  %v943_v2 = vadd.f32 1.0, %v1816_v44 }
 0x429   :  { %1821 = vrcp.f32 %v936_v47 }
 0x42a   :  { %1823 = vrcp.f32 %v943_v2 }
 0x432   :  { %v1820_v55 = vpop.eup %1819 }
 0x433   :  { %v1822_v54 = vpop.eup %1821  ;;  %v947_v21 = vmul.f32 %v1820_v55, %v1818_v52 }
 0x434   :  { %v946_v62 = vmul.f32 %v1822_v54, %v2407_v50  ;;  %v1824_v0 = vpop.eup %1823 }
 0x436   :  { %v2453_v51 = vadd.f32 %v947_v21, %v946_v62  ;;  %v2514_v62 = vld [vmem:[%s2773_s2] ss:$16 sps:$4 sm:$0xff]  }
 0x438   :  { %1825 = vtanh.f32 %v2453_v51 }
 0x442   :  { %v1826_v45 = vpop.eup %1825 }
 0x443   :  { %v2456_v56 = vmul.f32 %v1826_v45, %v1824_v0  ;;  %v2530_v0 = vld [vmem:[%s2773_s2 + $0x20] ss:$16 sps:$4 sm:$0xff]  }
 0x445   :  { %v952_v61 = vpack.c.bf16 %v2456_v56, %v2456_v56 }
 0x447   :  { %990 = vmatmul.mubr.bf16.vlgmr.msra.gmra.mrb[28].mxu0 %v952_v61  ;;  %1031 = vmatmul.mubr.bf16.vlgmr.msra.gmra.mrb[36].mxu1 %v952_v61 }
 0x448   :  { %1074 = vmatpush1.bf16.msra.mxu0 %v1979_v5  ;;  %1115 = vmatpush1.bf16.msra.mxu1 %v2110_v27  ;;  %v2495_v5 = vld [vmem:[%s2773_s2 + $0x4] ss:$16 sps:$4 sm:$0xff]  }
 0x449   :  { %1075 = vmatprep.subr.bf16.mxu0 %v1984_v6  ;;  %1116 = vmatprep.subr.bf16.mxu1 %v2117_v28 }
 0x44a   :  { %1105 = vmatprep.mubr.bf16.mxu0 %v2796_v3  ;;  %1146 = vmatprep.mubr.bf16.mxu1 %v2796_v3 }
 0x44c   :  { %1076 = vmatpush1.bf16.msra.mxu0 %v1992_v7  ;;  %1117 = vmatpush1.bf16.msra.mxu1 %v2125_v29 }
 0x44d   :  { %1077 = vmatprep.subr.bf16.mxu0 %v1999_v8  ;;  %1118 = vmatprep.subr.bf16.mxu1 %v2132_v30  ;;  %v2802_v8 = vld [vmem:[#allocation19_spill] sm:$0xff] }
 0x450   :  { %1078 = vmatpush1.bf16.msra.mxu0 %v2008_v10  ;;  %1119 = vmatpush1.bf16.msra.mxu1 %v2141_v31 }
 0x451   :  { %1079 = vmatprep.subr.bf16.mxu0 %v2014_v11  ;;  %1120 = vmatprep.subr.bf16.mxu1 %v2148_v32  ;;  %v2803_v11 = vld [vmem:[#allocation9_spill] sm:$0xff] }
 0x454   :  { %1080 = vmatpush1.bf16.msra.mxu0 %v2020_v12  ;;  %1121 = vmatpush1.bf16.msra.mxu1 %v2157_v33 }
 0x455   :  { %1081 = vmatprep.subr.bf16.mxu0 %v2034_v15  ;;  %1122 = vmatprep.subr.bf16.mxu1 %v2164_v34 }
 0x458   :  { %1082 = vmatpush1.bf16.msra.mxu0 %v2043_v17  ;;  %1123 = vmatpush1.bf16.msra.mxu1 %v2171_v35 }
 0x459   :  { %1083 = vmatprep.subr.bf16.mxu0 %v2050_v18  ;;  %1124 = vmatprep.subr.bf16.mxu1 %v2178_v36 }
 0x45c   :  { %1084 = vmatpush1.bf16.msra.mxu0 %v2059_v19  ;;  %1125 = vmatpush1.bf16.msra.mxu1 %v2184_v37  ;;  %v2804_v19 = vld [vmem:[#allocation10_spill] sm:$0xff] }
 0x45d   :  { %1085 = vmatprep.subr.bf16.mxu0 %v2066_v20  ;;  %1126 = vmatprep.subr.bf16.mxu1 %v2190_v38 }
 0x460   :  { %1086 = vmatpush1.bf16.msra.mxu0 %v2078_v22  ;;  %1127 = vmatpush1.bf16.msra.mxu1 %v2196_v39 }
 0x461   :  { %1087 = vmatprep.subr.bf16.mxu0 %v2085_v23  ;;  %1128 = vmatprep.subr.bf16.mxu1 %v2202_v40 }
 0x464   :  { %1088 = vmatpush1.bf16.msra.mxu0 %v2094_v24  ;;  %1129 = vmatpush1.bf16.msra.mxu1 %v2208_v41 }
 0x465   :  { %1189 = vmatprep.subr.bf16.mxu0 %v2495_v5  ;;  %1230 = vmatprep.subr.bf16.mxu1 %v2101_v25 }
 0x51a   :  { %v991_v6 = vpop.f32.mrb[28].mxu0  ;;  %v1032_v7 = vpop.f32.mrb[36].mxu1 }
 0x51b   :  { %v1039_v10 = vadd.f32 %v991_v6, %v2802_v8  ;;  %v1041_v12 = vadd.f32 %v1032_v7, %v2803_v11  ;;  %v993_v15 = vpop.f32.mrb[29].mxu0  ;;  %v1034_v17 = vpop.f32.mrb[37].mxu1  ;;  %v2805_v6 = vld [vmem:[#allocation11_spill] sm:$0xff] }
 0x51c   :  { %v1040_v18 = vadd.f32 %v993_v15, %v2297_v60  ;;  %v1042_v20 = vadd.f32 %v1034_v17, %v2804_v19  ;;  %v995_v22 = vpop.f32.mrb[30].mxu0  ;;  %v1036_v23 = vpop.f32.mrb[38].mxu1 }
 0x51d   :  { %v1639_v24 = vmul.f32 -1.442695, %v1039_v10  ;;  %v996_v50 = vpop.f32.mrb[31].mxu0  ;;  %v1037_v16 = vpop.f32.mrb[39].mxu1 }
 0x51e   :  { %v1640_v63 = vmul.f32 -1.442695, %v1040_v18  ;;  %v1641_v25 = vmul.f32 -1.442695, %v1042_v20 }
 0x51f   :  { %1827 = vpow2.f32 %v1639_v24 }
 0x520   :  { %1829 = vpow2.f32 %v1640_v63 }
 0x521   :  { %1831 = vpow2.f32 %v1641_v25 }
 0x522   :  { %1833 = vtanh.f32 %v1041_v12  ;;  %v2806_v12 = vld [vmem:[#allocation12_spill] sm:$0xff] }
 0x529   :  { %v1828_v9 = vpop.eup %1827 }
 0x52a   :  { %v1830_v48 = vpop.eup %1829  ;;  %v1046_v1 = vadd.f32 1.0, %v1828_v9 }
 0x52b   :  { %v1052_v4 = vadd.f32 1.0, %v1830_v48  ;;  %v1832_v60 = vpop.eup %1831 }
 0x52c   :  { %1835 = vrcp.f32 %v1046_v1  ;;  %v1834_v53 = vpop.eup %1833  ;;  %v1059_v47 = vadd.f32 1.0, %v1832_v60 }
 0x52d   :  { %1837 = vrcp.f32 %v1052_v4 }
 0x52e   :  { %1839 = vrcp.f32 %v1059_v47  ;;  %v1909_v47 = vld [vmem:[%s2773_s2 + $0x2c] ss:$16 sps:$4 sm:$0xff]  }
 0x536   :  { %v1836_v49 = vpop.eup %1835 }
 0x537   :  { %v1838_v42 = vpop.eup %1837  ;;  %v1063_v43 = vmul.f32 %v1836_v49, %v1834_v53 }
 0x538   :  { %v1062_v44 = vmul.f32 %v1838_v42, %v2453_v51  ;;  %v1840_v55 = vpop.eup %1839  ;;  %v2521_v51 = vld [vmem:[%s2773_s2 + $0x24] ss:$16 sps:$4 sm:$0xff]  }
 0x53a   :  { %v2504_v52 = vadd.f32 %v1063_v43, %v1062_v44  ;;  %v1908_v43 = vld [vmem:[%s2773_s2 + $0x8] ss:$16 sps:$4 sm:$0xff]  }
 0x53b   :  { %v1910_v44 = vld [vmem:[%s2773_s2 + $0x28] ss:$16 sps:$4 sm:$0xff]  }
 0x53c   :  { %1841 = vtanh.f32 %v2504_v52 }
 0x546   :  { %v1842_v54 = vpop.eup %1841 }
 0x547   :  { %v2507_v21 = vmul.f32 %v1842_v54, %v1840_v55  ;;  %v1913_v55 = vld [vmem:[%s2773_s2 + $0x6c] ss:$16 sps:$4 sm:$0xff]   ;;  %v1914_v54 = vld [vmem:[%s2773_s2 + $0x68] ss:$16 sps:$4 sm:$0xff]  }
 0x549   :  { %v1068_v2 = vpack.c.bf16 %v2507_v21, %v2507_v21 }
 0x54b   :  { %1106 = vmatmul.mubr.bf16.vlgmr.msra.gmra.mrb[32].mxu0 %v1068_v2  ;;  %1147 = vmatmul.mubr.bf16.vlgmr.msra.gmra.mrb[40].mxu1 %v1068_v2  ;;  %v1915_v2 = vld [vmem:[%s2773_s2 + $0x8c] ss:$16 sps:$4 sm:$0xff]  }
 0x54c   :  { %1190 = vmatpush1.bf16.msra.mxu0 %v2514_v62  ;;  %1231 = vmatpush1.bf16.msra.mxu1 %v2110_v27  ;;  %v2537_v27 = vld [vmem:[%s2773_s2 + $0x44] ss:$16 sps:$4 sm:$0xff]  }
 0x54d   :  { %1191 = vmatprep.subr.bf16.mxu0 %v2521_v51  ;;  %1232 = vmatprep.subr.bf16.mxu1 %v2117_v28  ;;  %v2544_v28 = vld [vmem:[%s2773_s2 + $0x40] ss:$16 sps:$4 sm:$0xff]  }
 0x54e   :  { %1221 = vmatprep.mubr.bf16.mxu0 %v2796_v3  ;;  %1262 = vmatprep.mubr.bf16.mxu1 %v2796_v3 }
 0x550   :  { %1192 = vmatpush1.bf16.msra.mxu0 %v2530_v0  ;;  %1233 = vmatpush1.bf16.msra.mxu1 %v2125_v29  ;;  %v2551_v29 = vld [vmem:[%s2773_s2 + $0x64] ss:$16 sps:$4 sm:$0xff]  }
 0x551   :  { %1193 = vmatprep.subr.bf16.mxu0 %v2537_v27  ;;  %1234 = vmatprep.subr.bf16.mxu1 %v2132_v30  ;;  %v2558_v30 = vld [vmem:[%s2773_s2 + $0x60] ss:$16 sps:$4 sm:$0xff]  }
 0x554   :  { %1194 = vmatpush1.bf16.msra.mxu0 %v2544_v28  ;;  %1235 = vmatpush1.bf16.msra.mxu1 %v2141_v31  ;;  %v2565_v31 = vld [vmem:[%s2773_s2 + $0x84] ss:$16 sps:$4 sm:$0xff]  }
 0x555   :  { %1195 = vmatprep.subr.bf16.mxu0 %v2551_v29  ;;  %1236 = vmatprep.subr.bf16.mxu1 %v2148_v32  ;;  %v2572_v32 = vld [vmem:[%s2773_s2 + $0x80] ss:$16 sps:$4 sm:$0xff]  }
 0x558   :  { %1196 = vmatpush1.bf16.msra.mxu0 %v2558_v30  ;;  %1237 = vmatpush1.bf16.msra.mxu1 %v2157_v33  ;;  %v2579_v33 = vld [vmem:[%s2773_s2 + $0xa4] ss:$16 sps:$4 sm:$0xff]  }
 0x559   :  { %1197 = vmatprep.subr.bf16.mxu0 %v2565_v31  ;;  %1238 = vmatprep.subr.bf16.mxu1 %v2164_v34  ;;  %v2586_v34 = vld [vmem:[%s2773_s2 + $0xa0] ss:$16 sps:$4 sm:$0xff]  }
 0x55c   :  { %1198 = vmatpush1.bf16.msra.mxu0 %v2572_v32  ;;  %1239 = vmatpush1.bf16.msra.mxu1 %v2171_v35  ;;  %v2593_v35 = vld [vmem:[%s2773_s2 + $0xc4] ss:$16 sps:$4 sm:$0xff]  }
 0x55d   :  { %1199 = vmatprep.subr.bf16.mxu0 %v2579_v33  ;;  %1240 = vmatprep.subr.bf16.mxu1 %v2178_v36  ;;  %v2600_v36 = vld [vmem:[%s2773_s2 + $0xc0] ss:$16 sps:$4 sm:$0xff]  }
 0x560   :  { %1200 = vmatpush1.bf16.msra.mxu0 %v2586_v34  ;;  %1241 = vmatpush1.bf16.msra.mxu1 %v2184_v37  ;;  %v2607_v37 = vld [vmem:[%s2773_s2 + $0xe4] ss:$16 sps:$4 sm:$0xff]  }
 0x561   :  { %1201 = vmatprep.subr.bf16.mxu0 %v2593_v35  ;;  %1242 = vmatprep.subr.bf16.mxu1 %v2190_v38  ;;  %v2614_v38 = vld [vmem:[%s2773_s2 + $0xe0] ss:$16 sps:$4 sm:$0xff]  }
 0x564   :  { %1202 = vmatpush1.bf16.msra.mxu0 %v2600_v36  ;;  %1243 = vmatpush1.bf16.msra.mxu1 %v2196_v39  ;;  %v1907_v39 = vld [vmem:[%s2773_s2 + $0xc] ss:$16 sps:$4 sm:$0xff]  }
 0x565   :  { %1203 = vmatprep.subr.bf16.mxu0 %v2607_v37  ;;  %1244 = vmatprep.subr.bf16.mxu1 %v2202_v40 }
 0x568   :  { %1204 = vmatpush1.bf16.msra.mxu0 %v2614_v38  ;;  %1245 = vmatpush1.bf16.msra.mxu1 %v2208_v41 }
 0x569   :  { %1305 = vmatprep.subr.bf16.mxu0 %v2495_v5  ;;  %1346 = vmatprep.subr.bf16.mxu1 %v1907_v39 }
 0x61e   :  { %v1107_v45 = vpop.f32.mrb[32].mxu0  ;;  %v1148_v61 = vpop.f32.mrb[40].mxu1 }
 0x61f   :  { %v1155_v40 = vadd.f32 %v1107_v45, %v2299_v58  ;;  %v1157_v7 = vadd.f32 %v1148_v61, %v2805_v6  ;;  %v1109_v8 = vpop.f32.mrb[33].mxu0  ;;  %v1150_v10 = vpop.f32.mrb[41].mxu1  ;;  %v2808_v45 = vld [vmem:[#allocation20_spill] sm:$0xff]  ;;  %v2809_v61 = vld [vmem:[#allocation14_spill] sm:$0xff] }
 0x620   :  { %v1156_v11 = vadd.f32 %v1109_v8, %v2301_v59  ;;  %v1158_v15 = vadd.f32 %v1150_v10, %v2806_v12  ;;  %v1111_v41 = vpop.f32.mrb[34].mxu0  ;;  %v1152_v17 = vpop.f32.mrb[42].mxu1 }
 0x621   :  { %v1642_v5 = vmul.f32 -1.442695, %v1155_v40  ;;  %v1112_v18 = vpop.f32.mrb[35].mxu0  ;;  %v1153_v19 = vpop.f32.mrb[43].mxu1 }
 0x622   :  { %v1643_v20 = vmul.f32 -1.442695, %v1156_v11  ;;  %v1644_v22 = vmul.f32 -1.442695, %v1158_v15 }
 0x623   :  { %1843 = vpow2.f32 %v1642_v5 }
 0x624   :  { %1845 = vpow2.f32 %v1643_v20 }
 0x625   :  { %1847 = vpow2.f32 %v1644_v22 }
 0x626   :  { %1849 = vtanh.f32 %v1157_v7 }
 0x62d   :  { %v1844_v23 = vpop.eup %1843 }
 0x62e   :  { %v1846_v24 = vpop.eup %1845  ;;  %v1162_v58 = vadd.f32 1.0, %v1844_v23 }
 0x62f   :  { %v1168_v50 = vadd.f32 1.0, %v1846_v24  ;;  %v1848_v59 = vpop.eup %1847 }
 0x630   :  { %1851 = vrcp.f32 %v1162_v58  ;;  %v1850_v16 = vpop.eup %1849  ;;  %v1175_v48 = vadd.f32 1.0, %v1848_v59 }
 0x631   :  { %1853 = vrcp.f32 %v1168_v50 }
 0x632   :  { %1855 = vrcp.f32 %v1175_v48  ;;  %v1427_v48 = vpack.c.bf16 %v2364_v57, %v2318_v26  ;;  %v1759_v26 = vld [vmem:[%s2775_s3 + $0x20] sm:$0xff]   ;;  %v1760_v57 = vld [vmem:[%s2775_s3 + $0x28] sm:$0xff]  }
 0x63a   :  { %v1852_v63 = vpop.eup %1851 }
 0x63b   :  { %v1854_v25 = vpop.eup %1853  ;;  %v1179_v9 = vmul.f32 %v1852_v63, %v1850_v16 }
 0x63c   :  { %v1178_v1 = vmul.f32 %v1854_v25, %v2504_v52  ;;  %v1856_v60 = vpop.eup %1855  ;;  %v1911_v52 = vld [vmem:[%s2773_s2 + $0x4c] ss:$16 sps:$4 sm:$0xff]  }
 0x63e   :  { %v2627_v4 = vadd.f32 %v1179_v9, %v1178_v1  ;;  %v1756_v9 = vld [vmem:[%s2775_s3 + $0x8] sm:$0xff]   ;;  %v1757_v1 = vld [vmem:[%s2775_s3 + $0x10] sm:$0xff]  }
 0x640   :  { %1857 = vtanh.f32 %v2627_v4 }
 0x64a   :  { %v1858_v53 = vpop.eup %1857 }
 0x64b   :  { %v2630_v49 = vmul.f32 %v1858_v53, %v1856_v60  ;;  %v1761_v60 = vld [vmem:[%s2775_s3 + $0x30] sm:$0xff]   ;;  %v1762_v53 = vld [vmem:[%s2775_s3 + $0x38] sm:$0xff]  }
 0x64d   :  { %v1184_v42 = vpack.c.bf16 %v2630_v49, %v2630_v49 }
 0x64f   :  { %1222 = vmatmul.mubr.bf16.vlgmr.msra.gmra.mrb[36].mxu0 %v1184_v42  ;;  %1263 = vmatmul.mubr.bf16.vlgmr.msra.gmra.mrb[44].mxu1 %v1184_v42  ;;  %v1428_v42 = vpack.c.bf16 %v2456_v56, %v2410_v46 }
 0x650   :  { %1306 = vmatpush1.bf16.msra.mxu0 %v2514_v62  ;;  %1347 = vmatpush1.bf16.msra.mxu1 %v1908_v43  ;;  %v1916_v62 = vld [vmem:[%s2773_s2 + $0x88] ss:$16 sps:$4 sm:$0xff]   ;;  %v1429_v43 = vpack.c.bf16 %v2630_v49, %v2507_v21 }
 0x651   :  { %1307 = vmatprep.subr.bf16.mxu0 %v2521_v51  ;;  %1348 = vmatprep.subr.bf16.mxu1 %v1909_v47  ;;  %v1917_v51 = vld [vmem:[%s2773_s2 + $0xac] ss:$16 sps:$4 sm:$0xff]  }
 0x652   :  { %1337 = vmatprep.mubr.bf16.mxu0 %v2796_v3  ;;  %1378 = vmatprep.mubr.bf16.mxu1 %v2796_v3  ;;  %v1912_v3 = vld [vmem:[%s2773_s2 + $0x48] ss:$16 sps:$4 sm:$0xff]  }
 0x654   :  { %1308 = vmatpush1.bf16.msra.mxu0 %v2530_v0  ;;  %1349 = vmatpush1.bf16.msra.mxu1 %v1910_v44  ;;  %v1918_v0 = vld [vmem:[%s2773_s2 + $0xa8] ss:$16 sps:$4 sm:$0xff]  }
 0x655   :  { %1309 = vmatprep.subr.bf16.mxu0 %v2537_v27  ;;  %1350 = vmatprep.subr.bf16.mxu1 %v1911_v52  ;;  %v1919_v27 = vld [vmem:[%s2773_s2 + $0xcc] ss:$16 sps:$4 sm:$0xff]  }
 0x658   :  { %1310 = vmatpush1.bf16.msra.mxu0 %v2544_v28  ;;  %1351 = vmatpush1.bf16.msra.mxu1 %v1912_v3  ;;  %v1920_v28 = vld [vmem:[%s2773_s2 + $0xc8] ss:$16 sps:$4 sm:$0xff]  }
 0x659   :  { %1311 = vmatprep.subr.bf16.mxu0 %v2551_v29  ;;  %1352 = vmatprep.subr.bf16.mxu1 %v1913_v55  ;;  %v1921_v29 = vld [vmem:[%s2773_s2 + $0xec] ss:$16 sps:$4 sm:$0xff]   ;;  %v2810_v3 = vld [vmem:[#allocation16_spill] sm:$0xff] }
 0x65c   :  { %1312 = vmatpush1.bf16.msra.mxu0 %v2558_v30  ;;  %1353 = vmatpush1.bf16.msra.mxu1 %v1914_v54  ;;  %v1922_v30 = vld [vmem:[%s2773_s2 + $0xe8] ss:$16 sps:$4 sm:$0xff]  }
 0x65d   :  { %1313 = vmatprep.subr.bf16.mxu0 %v2565_v31  ;;  %1354 = vmatprep.subr.bf16.mxu1 %v1915_v2  ;;  %v1755_v31 = vld [vmem:[%s2775_s3] sm:$0xff]  }
 0x660   :  { %1314 = vmatpush1.bf16.msra.mxu0 %v2572_v32  ;;  %1355 = vmatpush1.bf16.msra.mxu1 %v1916_v62  ;;  %v2811_v62 = vld [vmem:[#allocation21_spill] sm:$0xff] }
 0x661   :  { %1315 = vmatprep.subr.bf16.mxu0 %v2579_v33  ;;  %1356 = vmatprep.subr.bf16.mxu1 %v1917_v51 }
 0x664   :  { %1316 = vmatpush1.bf16.msra.mxu0 %v2586_v34  ;;  %1357 = vmatpush1.bf16.msra.mxu1 %v1918_v0  ;;  %v2812_v0 = vld [vmem:[#allocation18_spill] sm:$0xff] }
 0x665   :  { %1317 = vmatprep.subr.bf16.mxu0 %v2593_v35  ;;  %1358 = vmatprep.subr.bf16.mxu1 %v1919_v27  ;;  %v2807_v35 = vld [vmem:[#allocation13_spill] sm:$0xff] }
 0x668   :  { %1318 = vmatpush1.bf16.msra.mxu0 %v2600_v36  ;;  %1359 = vmatpush1.bf16.msra.mxu1 %v1920_v28 }
 0x669   :  { %1319 = vmatprep.subr.bf16.mxu0 %v2607_v37  ;;  %1360 = vmatprep.subr.bf16.mxu1 %v1921_v29 }
 0x66c   :  { %1320 = vmatpush1.bf16.msra.mxu0 %v2614_v38  ;;  %1361 = vmatpush1.bf16.msra.mxu1 %v1922_v30 }
 0x66d   :  { %1672 = vmatprep.subr.bf16.mxu0 %v1755_v31 }
 0x722   :  { %v1223_v32 = vpop.f32.mrb[36].mxu0  ;;  %v1264_v33 = vpop.f32.mrb[44].mxu1 }
 0x723   :  { %v1271_v34 = vadd.f32 %v1223_v32, %v2303_v13  ;;  %v1273_v36 = vadd.f32 %v1264_v33, %v2807_v35  ;;  %v1225_v37 = vpop.f32.mrb[37].mxu0  ;;  %v1266_v39 = vpop.f32.mrb[45].mxu1 }
 0x724   :  { %v1272_v38 = vadd.f32 %v1225_v37, %v2808_v45  ;;  %v1274_v40 = vadd.f32 %v1266_v39, %v2809_v61  ;;  %v1227_v6 = vpop.f32.mrb[38].mxu0  ;;  %v1268_v7 = vpop.f32.mrb[46].mxu1  ;;  %v1651_v61 = vld [vmem:[%s2776_s5] ss:$0 sm:$0xff] }
 0x725   :  { %v1645_v8 = vmul.f32 -1.442695, %v1271_v34  ;;  %v1228_v10 = vpop.f32.mrb[39].mxu0  ;;  %v1269_v11 = vpop.f32.mrb[47].mxu1 }
 0x726   :  { %v1646_v12 = vmul.f32 -1.442695, %v1272_v38  ;;  %v1647_v15 = vmul.f32 -1.442695, %v1274_v40 }
 0x727   :  { %1859 = vpow2.f32 %v1645_v8 }
 0x728   :  { %1861 = vpow2.f32 %v1646_v12 }
 0x729   :  { %1863 = vpow2.f32 %v1647_v15 }
 0x72a   :  { %1865 = vtanh.f32 %v1273_v36 }
 0x731   :  { %v1860_v41 = vpop.eup %1859 }
 0x732   :  { %v1862_v17 = vpop.eup %1861  ;;  %v1278_v13 = vadd.f32 1.0, %v1860_v41 }
 0x733   :  { %v1284_v5 = vadd.f32 1.0, %v1862_v17  ;;  %v1864_v18 = vpop.eup %1863 }
 0x734   :  { %1867 = vrcp.f32 %v1278_v13  ;;  %v1866_v19 = vpop.eup %1865  ;;  %v1291_v24 = vadd.f32 1.0, %v1864_v18 }
 0x735   :  { %1869 = vrcp.f32 %v1284_v5 }
 0x736   :  { %1871 = vrcp.f32 %v1291_v24 }
 0x73e   :  { %v1868_v20 = vpop.eup %1867 }
 0x73f   :  { %v1870_v22 = vpop.eup %1869  ;;  %v1295_v23 = vmul.f32 %v1868_v20, %v1866_v19 }
 0x740   :  { %v1294_v58 = vmul.f32 %v1870_v22, %v2627_v4  ;;  %v1872_v59 = vpop.eup %1871  ;;  %v1758_v4 = vld [vmem:[%s2775_s3 + $0x18] sm:$0xff]  }
 0x742   :  { %v2704_v50 = vadd.f32 %v1295_v23, %v1294_v58 }
 0x744   :  { %1873 = vtanh.f32 %v2704_v50 }
 0x74e   :  { %v1874_v16 = vpop.eup %1873 }
 0x74f   :  { %v2707_v63 = vmul.f32 %v1874_v16, %v1872_v59 }
 0x751   :  { %v1300_v25 = vpack.c.bf16 %v2707_v63, %v2707_v63 }
 0x753   :  { %1338 = vmatmul.mubr.bf16.vlgmr.msra.gmra.mrb[40].mxu0 %v1300_v25  ;;  %1379 = vmatmul.mubr.bf16.vlgmr.msra.gmra.mrb[48].mxu1 %v1300_v25 }
 0x754   :  { %1673 = vmatpush3.bf16.msra.mxu0 %v1755_v31  ;;  %1688 = vmatprep.mubr.bf16.mxu0 %v1427_v48 }
 0x755   :  { %1674 = vmatprep.subr.bf16.mxu0 %v1756_v9 }
 0x758   :  { %1675 = vmatpush3.bf16.msra.mxu0 %v1756_v9 }
 0x759   :  { %1676 = vmatprep.subr.bf16.mxu0 %v1757_v1 }
 0x75c   :  { %1677 = vmatpush3.bf16.msra.mxu0 %v1757_v1 }
 0x75d   :  { %1678 = vmatprep.subr.bf16.mxu0 %v1758_v4 }
 0x760   :  { %1679 = vmatpush3.bf16.msra.mxu0 %v1758_v4 }
 0x761   :  { %1680 = vmatprep.subr.bf16.mxu0 %v1759_v26 }
 0x764   :  { %1681 = vmatpush3.bf16.msra.mxu0 %v1759_v26 }
 0x765   :  { %1682 = vmatprep.subr.bf16.mxu0 %v1760_v57 }
 0x768   :  { %1683 = vmatpush3.bf16.msra.mxu0 %v1760_v57 }
 0x769   :  { %1684 = vmatprep.subr.bf16.mxu0 %v1761_v60 }
 0x76c   :  { %1685 = vmatpush3.bf16.msra.mxu0 %v1761_v60 }
 0x76d   :  { %1686 = vmatprep.subr.bf16.mxu0 %v1762_v53 }
 0x770   :  { %1687 = vmatpush3.bf16.msra.mxu0 %v1762_v53 }
 0x773   :  { %1689 = vmatmul.mubr.bf16.vlgmr.msra.gmra.mrb[44].mxu0 %v1428_v42 }
 0x774   :  { %1692 = vmatprep.mubr.bf16.mxu0 %v1429_v43 }
 0x826   :  { %v1339_v47 = vpop.f32.mrb[40].mxu0  ;;  %v1380_v44 = vpop.f32.mrb[48].mxu1 }
 0x827   :  { %v1387_v52 = vadd.f32 %v1339_v47, %v2307_v14  ;;  %v1389_v55 = vadd.f32 %v1380_v44, %v2810_v3  ;;  %v1341_v54 = vpop.f32.mrb[41].mxu0  ;;  %v1382_v2 = vpop.f32.mrb[49].mxu1 }
 0x828   :  { %v1388_v51 = vadd.f32 %v1341_v54, %v2811_v62  ;;  %v1390_v27 = vadd.f32 %v1382_v2, %v2812_v0  ;;  %v1343_v28 = vpop.f32.mrb[42].mxu0  ;;  %v1384_v29 = vpop.f32.mrb[50].mxu1 }
 0x829   :  { %v1648_v46 = vmul.f32 -1.442695, %v1387_v52  ;;  %v1344_v56 = vpop.f32.mrb[43].mxu0  ;;  %v1385_v30 = vpop.f32.mrb[51].mxu1 }
 0x82a   :  { %v1649_v21 = vmul.f32 -1.442695, %v1388_v51  ;;  %v1650_v49 = vmul.f32 -1.442695, %v1390_v27 }
 0x82b   :  { %1875 = vpow2.f32 %v1648_v46 }
 0x82c   :  { %1877 = vpow2.f32 %v1649_v21 }
 0x82d   :  { %1879 = vpow2.f32 %v1650_v49 }
 0x82e   :  { %1881 = vtanh.f32 %v1389_v55 }
 0x835   :  { %v1876_v31 = vpop.eup %1875 }
 0x836   :  { %v1878_v32 = vpop.eup %1877  ;;  %v1394_v14 = vadd.f32 1.0, %v1876_v31 }
 0x837   :  { %v1400_v33 = vadd.f32 1.0, %v1878_v32  ;;  %v1880_v34 = vpop.eup %1879 }
 0x838   :  { %1883 = vrcp.f32 %v1394_v14  ;;  %v1882_v35 = vpop.eup %1881  ;;  %v1407_v45 = vadd.f32 1.0, %v1880_v34 }
 0x839   :  { %1885 = vrcp.f32 %v1400_v33 }
 0x83a   :  { %1887 = vrcp.f32 %v1407_v45 }
 0x842   :  { %v1884_v36 = vpop.eup %1883 }
 0x843   :  { %v1886_v37 = vpop.eup %1885  ;;  %v1411_v39 = vmul.f32 %v1884_v36, %v1882_v35 }
 0x844   :  { %v1410_v38 = vmul.f32 %v1886_v37, %v2704_v50  ;;  %v1888_v17 = vpop.eup %1887 }
 0x846   :  { %v1690_v40 = vpop.f32.mrb[44].mxu0  ;;  %v1412_v6 = vadd.f32 %v1411_v39, %v1410_v38 }
 0x847   :  { %v1545_v7 = vadd.f32 %v1690_v40, %v1651_v61  ;;  %v1536_v8 = vpop.f32.mrb[45].mxu0 }
 0x848   :  { %v1537_v10 = vadd.f32 %v1651_v61, %v1536_v8  ;;  %v1691_v11 = vpop.f32.mrb[46].mxu0  ;;  %1889 = vtanh.f32 %v1412_v6 }
 0x849   :  { %1569 = vst [vmem:[%s2777_s6 + $0x10] sm:$0xff] %v1545_v7  ;;  %v1548_v12 = vadd.f32 %v1691_v11, %v1651_v61  ;;  %v1539_v15 = vpop.f32.mrb[47].mxu0 }
 0x84a   :  { %1567 = vst [vmem:[%s2777_s6] sm:$0xff] %v1537_v10  ;;  %v1540_v41 = vadd.f32 %v1651_v61, %v1539_v15 }
 0x84b   :  { %1570 = vst [vmem:[%s2777_s6 + $0x18] sm:$0xff] %v1548_v12 }
 0x84c   :  { %1568 = vst [vmem:[%s2777_s6 + $0x8] sm:$0xff] %v1540_v41 }
 0x852   :  { %v1890_v13 = vpop.eup %1889 }
 0x853   :  { %v1414_v5 = vmul.f32 %v1890_v13, %v1888_v17 }
 0x855   :  { %v1416_v18 = vpack.c.bf16 %v1414_v5, %v1414_v5  ;;  %v1430_v19 = vpack.c.bf16 %v1414_v5, %v2707_v63 }
 0x857   :  { %1417 = vst [vmem:[#allocation4] sm:$0xf] %v1416_v18  ;;  %1693 = vmatmul.mubr.bf16.gmra.mrb[48].mxu0 %v1430_v19 }
 0x92a   :  { %v1694_v20 = vpop.f32.mrb[48].mxu0 }
 0x92b   :  { %v1561_v22 = vadd.f32 %v1694_v20, %v1651_v61  ;;  %v1552_v23 = vpop.f32.mrb[49].mxu0 }
 0x92c   :  { %v1553_v24 = vadd.f32 %v1651_v61, %v1552_v23  ;;  %v1695_v58 = vpop.f32.mrb[50].mxu0 }
 0x92d   :  { %1573 = vst [vmem:[%s2777_s6 + $0x30] sm:$0xff] %v1561_v22  ;;  %v1564_v50 = vadd.f32 %v1695_v58, %v1651_v61  ;;  %v1555_v59 = vpop.f32.mrb[51].mxu0 }
 0x92e   :  { %1571 = vst [vmem:[%s2777_s6 + $0x20] sm:$0xff] %v1553_v24  ;;  %v1556_v16 = vadd.f32 %v1651_v61, %v1555_v59 }
 0x92f   :  { %1574 = vst [vmem:[%s2777_s6 + $0x38] sm:$0xff] %v1564_v50 }
 0x930   :  { %1572 = vst [vmem:[%s2777_s6 + $0x28] sm:$0xff] %v1556_v16 }

</bundles_post_ra>
